<compile_context>
chip_gen: v7x
topology: tpu7x:2x2x1
jax: 0.10.0
libtpu: 0.0.40
codegen_flags: <defaults>
</compile_context>

<pallas_src>
import functools

import jax
import jax.numpy as jnp
from jax.experimental import pallas as pl
from jax.experimental.pallas import tpu as pltpu

_LANE = 128          # lane width: every feature dim padded to a multiple
_SUBLANE_BF16 = 16   # bf16 native vreg tile is (16, 128): 16-row batch tiles


def _round_up(x, m):
    return (x + m - 1) // m * m


def _cdiv(a, b):
    return (a + b - 1) // b


def _pad2d(a, rows, cols):
    r, c = a.shape
    if r == rows and c == cols:
        return a
    return jnp.pad(a, ((0, rows - r), (0, cols - c)))


def _sdae_kernel(x_ref,
                 w_enc_ref, b_enc_ref,
                 w_mu_ref, b_mu_ref,
                 w_dec1_ref, b_dec1_ref,
                 w_out_ref, b_out_ref,
                 z_ref, xrec_ref):
    """Fused StackedDAE forward for one batch tile.

    All four matmuls run on the MXU with f32 accumulation; bias add, ReLU and
    the sigmoid run on the VPU/EUP in f32. Zero padding keeps the math exact:
    padded hidden/latent columns stay 0 through ReLU and contribute nothing to
    the next matmul; padded output columns are ignored by the consumer.
    """
    cd = w_enc_ref.dtype  # compute dtype of matmul operands (bf16 or f32)

    x = x_ref[...]

    # encoder: Linear + ReLU
    h = jnp.dot(x, w_enc_ref[...], preferred_element_type=jnp.float32)
    h = jnp.maximum(h + b_enc_ref[...], 0.0)

    # _enc_mu: Linear (no activation)
    z = jnp.dot(h.astype(cd), w_mu_ref[...], preferred_element_type=jnp.float32)
    z = z + b_mu_ref[...]
    z_ref[...] = z.astype(z_ref.dtype)

    # decoder: Linear + ReLU
    h2 = jnp.dot(z.astype(cd), w_dec1_ref[...], preferred_element_type=jnp.float32)
    h2 = jnp.maximum(h2 + b_dec1_ref[...], 0.0)

    # _dec: Linear + Sigmoid (binary=True). Single EUP logistic path, exact.
    logits = jnp.dot(h2.astype(cd), w_out_ref[...], preferred_element_type=jnp.float32)
    logits = logits + b_out_ref[...]
    xrec_ref[...] = jax.nn.sigmoid(logits).astype(xrec_ref.dtype)


def prepare_params(params, compute_dtype=jnp.bfloat16):
    """Pad feature dims to 128-multiples and cast weights to the matmul
    compute dtype ONCE. Call this once per parameter set; pass the result to
    stacked_dae_forward for every batch (no per-call pad/cast HBM traffic)."""
    (w_enc, b_enc, w_mu, b_mu, w_dec1, b_dec1, w_out, b_out) = params
    D_in, H_enc = w_enc.shape
    Z = w_mu.shape[1]
    H_dec = w_dec1.shape[1]
    D_in_p = _round_up(D_in, _LANE)
    H_enc_p = _round_up(H_enc, _LANE)
    Z_p = _round_up(Z, _LANE)
    H_dec_p = _round_up(H_dec, _LANE)
    return (
        _pad2d(w_enc, D_in_p, H_enc_p).astype(compute_dtype),
        _pad2d(b_enc, 1, H_enc_p).astype(jnp.float32),
        _pad2d(w_mu, H_enc_p, Z_p).astype(compute_dtype),
        _pad2d(b_mu, 1, Z_p).astype(jnp.float32),
        _pad2d(w_dec1, Z_p, H_dec_p).astype(compute_dtype),
        _pad2d(b_dec1, 1, H_dec_p).astype(jnp.float32),
        _pad2d(w_out, H_dec_p, D_in_p).astype(compute_dtype),
        _pad2d(b_out, 1, D_in_p).astype(jnp.float32),
    )


def _has_multiple_tensorcores():
    """True for chips with >1 TensorCore per device (v7x)."""
    try:
        kind = jax.devices()[0].device_kind.lower()
    except Exception:
        return False
    return ("v7" in kind) or ("7x" in kind)


def _default_batch_tile(B):
    if B <= 256:
        return _round_up(B, _SUBLANE_BF16)
    if _has_multiple_tensorcores():
        # v7x: 2 TensorCores/chip -> grid must be >= 2 for "parallel" sharding,
        # and tiles stay <= 256 rows for the smaller (64 MiB) VMEM budget.
        return min(256, _round_up(_cdiv(B, 2), _SUBLANE_BF16))
    # v5e/v6e: one TensorCore, 128 MiB VMEM -> fewer, larger steps (<=512 rows),
    # tile chosen to minimize B_p padding (e.g. B=513 -> tile 272, B_p=544).
    n_tiles = _cdiv(B, 512)
    return min(512, _round_up(_cdiv(B, n_tiles), _SUBLANE_BF16))


def _vmem_limit_bytes(est_bytes):
    """Scoped-VMEM request: footprint * 1.25, clamped to ~75% of physical VMEM
    (v7x has 64 MiB per TensorCore; v5e/v6e have 128 MiB), floor 16 MiB."""
    phys = None
    try:
        phys = getattr(pltpu.get_tpu_info(), "vmem_capacity_bytes", None)
    except Exception:
        phys = None
    cap = int(phys * 3 // 4) if phys else 48 * 1024 * 1024
    want = _round_up(int(est_bytes * 1.25), 1 << 20)
    return max(16 * 1024 * 1024, min(want, cap))


@functools.partial(
    jax.jit, static_argnames=("out_dtype", "batch_tile", "single_buffer_weights"))
def _forward_impl(x, prepared, out_dtype, batch_tile, single_buffer_weights):
    (w_enc, b_enc, w_mu, b_mu, w_dec1, b_dec1, w_out, b_out) = prepared
    B, D_in = x.shape
    D_in_p, H_enc_p = w_enc.shape
    Z_p = w_mu.shape[1]
    H_dec_p = w_dec1.shape[1]
    compute_dtype = w_enc.dtype

    if batch_tile is None:
        batch_tile = _default_batch_tile(B)
    batch_tile = _round_up(batch_tile, _SUBLANE_BF16)
    B_p = _round_up(B, batch_tile)
    grid = (B_p // batch_tile,)

    # Per-call input padding/cast (params are pre-padded via prepare_params).
    x_p = _pad2d(x, B_p, D_in_p).astype(compute_dtype)

    # VMEM footprint estimate: resident weights (1x if single-buffered, 2x
    # otherwise) + double-buffered x / z / x_recon tiles.
    wsize = jnp.dtype(compute_dtype).itemsize
    osize = jnp.dtype(out_dtype).itemsize
    w_bytes = (D_in_p * H_enc_p + H_enc_p * Z_p
               + Z_p * H_dec_p + H_dec_p * D_in_p) * wsize
    b_bytes = (H_enc_p + Z_p + H_dec_p + D_in_p) * 4
    io_bytes = 2 * batch_tile * (D_in_p * wsize + Z_p * osize + D_in_p * osize)
    w_mult = 1 if single_buffer_weights else 2
    vmem_limit = _vmem_limit_bytes(w_mult * (w_bytes + b_bytes) + io_bytes)
    # TODO(synk): for production layer widths (e.g. 784x500+) add a K/N tiling
    # axis (N tiles in 256-multiples on v6e/v7x) with an f32 VMEM accumulator
    # instead of fully-resident weights; keep bf16 operands (no int path on
    # the v7x MXU).

    def tile_map(i):
        return (i, 0)

    def full_map(i):
        # Constant block index: blocks stay resident in VMEM across the grid.
        return (0, 0)

    if single_buffer_weights:
        def const_spec(shape):
            return pl.BlockSpec(shape, full_map, pipeline_mode=pl.Buffered(1))
    else:
        def const_spec(shape):
            return pl.BlockSpec(shape, full_map)

    in_specs = [
        pl.BlockSpec((batch_tile, D_in_p), tile_map),   # x
        const_spec((D_in_p, H_enc_p)),                  # W_enc
        const_spec((1, H_enc_p)),                       # b_enc
        const_spec((H_enc_p, Z_p)),                     # W_mu
        const_spec((1, Z_p)),                           # b_mu
        const_spec((Z_p, H_dec_p)),                     # W_dec1
        const_spec((1, H_dec_p)),                       # b_dec1
        const_spec((H_dec_p, D_in_p)),                  # W_out
        const_spec((1, D_in_p)),                        # b_out
    ]
    out_specs = [
        pl.BlockSpec((batch_tile, Z_p), tile_map),      # z (lane-padded)
        pl.BlockSpec((batch_tile, D_in_p), tile_map),   # x_recon (lane-padded)
    ]
    out_shape = [
        jax.ShapeDtypeStruct((B_p, Z_p), out_dtype),
        jax.ShapeDtypeStruct((B_p, D_in_p), out_dtype),
    ]

    z_p, xrec_p = pl.pallas_call(
        _sdae_kernel,
        grid_spec=pltpu.PrefetchScalarGridSpec(
            num_scalar_prefetch=0,
            grid=grid,
            in_specs=in_specs,
            out_specs=out_specs,
        ),
        out_shape=out_shape,
        compiler_params=pltpu.CompilerParams(
            dimension_semantics=("parallel",),
            vmem_limit_bytes=vmem_limit,
        ),
    )(x_p, w_enc, b_enc, w_mu, b_mu, w_dec1, b_dec1, w_out, b_out)

    return z_p, xrec_p


def stacked_dae_forward(x, prepared, out_dtype=jnp.bfloat16, batch_tile=None):
    """StackedDAE forward. `prepared` comes from prepare_params().

    Returns PADDED outputs (z_padded[B_p, Z_p], x_recon_padded[B_p, D_in_p]) in
    `out_dtype`; slice [:B, :z_dim] / [:B, :input_dim] where the result is
    consumed (deferring the slice avoids an extra HBM pass over the outputs).
    """
    try:
        return _forward_impl(x, prepared, out_dtype, batch_tile, True)
    except Exception:
        # Fallback if this Pallas build rejects pipeline_mode=pl.Buffered(1)
        # on the resident weight blocks: use default double-buffering.
        return _forward_impl(x, prepared, out_dtype, batch_tile, False)


def init_params(key, input_dim, encode_hidden, z_dim, decode_hidden):
    """PyTorch-Linear-style init: U(-1/sqrt(fan_in), 1/sqrt(fan_in)).

    Weights stored as (in_features, out_features), biases as (1, out_features).
    """
    def linear(k, fan_in, fan_out):
        kw, kb = jax.random.split(k)
        bound = 1.0 / jnp.sqrt(fan_in)
        w = jax.random.uniform(kw, (fan_in, fan_out), jnp.float32, -bound, bound)
        b = jax.random.uniform(kb, (1, fan_out), jnp.float32, -bound, bound)
        return w, b

    k1, k2, k3, k4 = jax.random.split(key, 4)
    w_enc, b_enc = linear(k1, input_dim, encode_hidden)     # encoder[0]
    w_mu, b_mu = linear(k2, encode_hidden, z_dim)           # _enc_mu
    w_dec1, b_dec1 = linear(k3, z_dim, decode_hidden)       # decoder[0]
    w_out, b_out = linear(k4, decode_hidden, input_dim)     # _dec
    return (w_enc, b_enc, w_mu, b_mu, w_dec1, b_dec1, w_out, b_out)


def reference_forward(x, params, compute_dtype=jnp.float32):
    """Pure-JAX reference. With compute_dtype=bf16 it mirrors the kernel's
    operand rounding (bf16 matmul inputs, f32 accumulation/activations)."""
    (w_enc, b_enc, w_mu, b_mu, w_dec1, b_dec1, w_out, b_out) = params

    def mm(a, w):
        return jnp.dot(a.astype(compute_dtype), w.astype(compute_dtype),
                       preferred_element_type=jnp.float32)

    h = jnp.maximum(mm(x, w_enc) + b_enc, 0.0)
    z = mm(h, w_mu) + b_mu
    h2 = jnp.maximum(mm(z, w_dec1) + b_dec1, 0.0)
    xr = jax.nn.sigmoid(mm(h2, w_out) + b_out)
    return z, xr


if __name__ == "__main__":
    # Small StackedDAE: input_dim=256, encodeLayer=[128], z_dim=32,
    # decodeLayer=[128], binary=True, activation='relu', dropout=0.
    B, D_IN, H_ENC, Z_DIM, H_DEC = 16, 256, 128, 32, 128

    key = jax.random.PRNGKey(0)
    kx, kp = jax.random.split(key)
    x = jax.random.uniform(kx, (B, D_IN), jnp.float32)  # "image-like" inputs in [0,1)
    params = init_params(kp, D_IN, H_ENC, Z_DIM, H_DEC)

    # Pad + bf16-cast the parameters once, outside the per-batch path.
    prepared = jax.block_until_ready(prepare_params(params))

    z_p, xr_p = stacked_dae_forward(x, prepared)          # padded bf16 outputs
    jax.block_until_ready((z_p, xr_p))

    # Slice where consumed (padded lanes/rows are mathematically inert).
    z = z_p[:B, :Z_DIM].astype(jnp.float32)
    x_rec = xr_p[:B, :D_IN].astype(jnp.float32)
    assert z.shape == (B, Z_DIM) and x_rec.shape == (B, D_IN)

    # Tight check vs. a reference using the same bf16 operand rounding
    # (remaining delta is the bf16 output-store rounding).
    z_bf, xr_bf = reference_forward(x, params, compute_dtype=jnp.bfloat16)
    assert jnp.allclose(z, z_bf, atol=2e-2, rtol=2e-2)
    assert jnp.allclose(x_rec, xr_bf, atol=1e-2, rtol=1e-2)

    # Loose sanity check vs. the pure-f32 forward (bf16 rounding tolerance).
    z_f32, xr_f32 = reference_forward(x, params, compute_dtype=jnp.float32)
    assert jnp.allclose(z, z_f32, atol=6e-2, rtol=6e-2)
    assert jnp.allclose(x_rec, xr_f32, atol=3e-2, rtol=3e-2)

    print("KERNEL_OK")
</pallas_src>

<mosaic_0001>
module attributes {stable_mosaic.version = 11 : i64} {
  func.func @_sdae_kernel(%arg0: i32, %arg1: memref<16x256xbf16, #tpu.memory_space<vmem>>, %arg2: memref<256x128xbf16, #tpu.memory_space<vmem>>, %arg3: memref<1x128xf32, #tpu.memory_space<vmem>>, %arg4: memref<128x128xbf16, #tpu.memory_space<vmem>>, %arg5: memref<1x128xf32, #tpu.memory_space<vmem>>, %arg6: memref<128x128xbf16, #tpu.memory_space<vmem>>, %arg7: memref<1x128xf32, #tpu.memory_space<vmem>>, %arg8: memref<128x256xbf16, #tpu.memory_space<vmem>>, %arg9: memref<1x256xf32, #tpu.memory_space<vmem>>, %arg10: memref<16x128xbf16, #tpu.memory_space<vmem>>, %arg11: memref<16x256xbf16, #tpu.memory_space<vmem>>) attributes {dimension_semantics = [#tpu.dimension_semantics<parallel>], iteration_bounds = array<i64: 1>, scalar_prefetch = 0 : i64, scratch_operands = 0 : i64, tpu.core_type = #tpu.core_type<tc>, window_params = [{transform_indices = @transform_0, window_bounds = array<i64: 16, 256>}, {pipeline_mode = #tpu.pipeline_mode<synchronous>, transform_indices = @transform_1, window_bounds = array<i64: 256, 128>}, {pipeline_mode = #tpu.pipeline_mode<synchronous>, transform_indices = @transform_2, window_bounds = array<i64: 1, 128>}, {pipeline_mode = #tpu.pipeline_mode<synchronous>, transform_indices = @transform_3, window_bounds = array<i64: 128, 128>}, {pipeline_mode = #tpu.pipeline_mode<synchronous>, transform_indices = @transform_4, window_bounds = array<i64: 1, 128>}, {pipeline_mode = #tpu.pipeline_mode<synchronous>, transform_indices = @transform_5, window_bounds = array<i64: 128, 128>}, {pipeline_mode = #tpu.pipeline_mode<synchronous>, transform_indices = @transform_6, window_bounds = array<i64: 1, 128>}, {pipeline_mode = #tpu.pipeline_mode<synchronous>, transform_indices = @transform_7, window_bounds = array<i64: 128, 256>}, {pipeline_mode = #tpu.pipeline_mode<synchronous>, transform_indices = @transform_8, window_bounds = array<i64: 1, 256>}, {transform_indices = @transform_9, window_bounds = array<i64: 16, 128>}, {transform_indices = @transform_10, window_bounds = array<i64: 16, 256>}]} {
    %c0 = arith.constant 0 : index
    %c0_0 = arith.constant 0 : index
    %0 = vector.load %arg1[%c0, %c0_0] : memref<16x256xbf16, #tpu.memory_space<vmem>>, vector<16x256xbf16>
    %c0_1 = arith.constant 0 : index
    %c0_2 = arith.constant 0 : index
    %1 = vector.load %arg2[%c0_1, %c0_2] : memref<256x128xbf16, #tpu.memory_space<vmem>>, vector<256x128xbf16>
    %cst = arith.constant dense<0.000000e+00> : vector<16x128xf32>
    %2 = tpu.matmul %0, %1, %cst {dimension_numbers = #tpu.dot_dimension_numbers<[1], [0], [0], [1], [0, 0, 1, 1], [], []>} : vector<16x256xbf16>, vector<256x128xbf16>, vector<16x128xf32> -> vector<16x128xf32>
    %c0_3 = arith.constant 0 : index
    %c0_4 = arith.constant 0 : index
    %3 = vector.load %arg3[%c0_3, %c0_4] : memref<1x128xf32, #tpu.memory_space<vmem>>, vector<1x128xf32>
    %4 = vector.broadcast %3 : vector<1x128xf32> to vector<16x128xf32>
    %5 = arith.addf %2, %4 : vector<16x128xf32>
    %cst_5 = arith.constant 0.000000e+00 : f32
    %6 = vector.broadcast %cst_5 : f32 to vector<16x128xf32>
    %7 = arith.maximumf %5, %6 : vector<16x128xf32>
    %8 = arith.truncf %7 : vector<16x128xf32> to vector<16x128xbf16>
    %c0_6 = arith.constant 0 : index
    %c0_7 = arith.constant 0 : index
    %9 = vector.load %arg4[%c0_6, %c0_7] : memref<128x128xbf16, #tpu.memory_space<vmem>>, vector<128x128xbf16>
    %cst_8 = arith.constant dense<0.000000e+00> : vector<16x128xf32>
    %10 = tpu.matmul %8, %9, %cst_8 {dimension_numbers = #tpu.dot_dimension_numbers<[1], [0], [0], [1], [0, 0, 1, 1], [], []>} : vector<16x128xbf16>, vector<128x128xbf16>, vector<16x128xf32> -> vector<16x128xf32>
    %c0_9 = arith.constant 0 : index
    %c0_10 = arith.constant 0 : index
    %11 = vector.load %arg5[%c0_9, %c0_10] : memref<1x128xf32, #tpu.memory_space<vmem>>, vector<1x128xf32>
    %12 = vector.broadcast %11 : vector<1x128xf32> to vector<16x128xf32>
    %13 = arith.addf %10, %12 : vector<16x128xf32>
    %14 = arith.truncf %13 : vector<16x128xf32> to vector<16x128xbf16>
    %c0_11 = arith.constant 0 : index
    %c0_12 = arith.constant 0 : index
    %15 = vector.load %arg10[%c0_11, %c0_12] : memref<16x128xbf16, #tpu.memory_space<vmem>>, vector<16x128xbf16>
    tpu.vector_store %arg10[%c0_11, %c0_12], %14 {strides = array<i32>} : memref<16x128xbf16, #tpu.memory_space<vmem>>, vector<16x128xbf16>,
    %16 = arith.truncf %13 : vector<16x128xf32> to vector<16x128xbf16>
    %c0_13 = arith.constant 0 : index
    %c0_14 = arith.constant 0 : index
    %17 = vector.load %arg6[%c0_13, %c0_14] : memref<128x128xbf16, #tpu.memory_space<vmem>>, vector<128x128xbf16>
    %cst_15 = arith.constant dense<0.000000e+00> : vector<16x128xf32>
    %18 = tpu.matmul %16, %17, %cst_15 {dimension_numbers = #tpu.dot_dimension_numbers<[1], [0], [0], [1], [0, 0, 1, 1], [], []>} : vector<16x128xbf16>, vector<128x128xbf16>, vector<16x128xf32> -> vector<16x128xf32>
    %c0_16 = arith.constant 0 : index
    %c0_17 = arith.constant 0 : index
    %19 = vector.load %arg7[%c0_16, %c0_17] : memref<1x128xf32, #tpu.memory_space<vmem>>, vector<1x128xf32>
    %20 = vector.broadcast %19 : vector<1x128xf32> to vector<16x128xf32>
    %21 = arith.addf %18, %20 : vector<16x128xf32>
    %cst_18 = arith.constant 0.000000e+00 : f32
    %22 = vector.broadcast %cst_18 : f32 to vector<16x128xf32>
    %23 = arith.maximumf %21, %22 : vector<16x128xf32>
    %24 = arith.truncf %23 : vector<16x128xf32> to vector<16x128xbf16>
    %c0_19 = arith.constant 0 : index
    %c0_20 = arith.constant 0 : index
    %25 = vector.load %arg8[%c0_19, %c0_20] : memref<128x256xbf16, #tpu.memory_space<vmem>>, vector<128x256xbf16>
    %cst_21 = arith.constant dense<0.000000e+00> : vector<16x256xf32>
    %26 = tpu.matmul %24, %25, %cst_21 {dimension_numbers = #tpu.dot_dimension_numbers<[1], [0], [0], [1], [0, 0, 1, 1], [], []>} : vector<16x128xbf16>, vector<128x256xbf16>, vector<16x256xf32> -> vector<16x256xf32>
    %c0_22 = arith.constant 0 : index
    %c0_23 = arith.constant 0 : index
    %27 = vector.load %arg9[%c0_22, %c0_23] : memref<1x256xf32, #tpu.memory_space<vmem>>, vector<1x256xf32>
    %28 = vector.broadcast %27 : vector<1x256xf32> to vector<16x256xf32>
    %29 = arith.addf %26, %28 : vector<16x256xf32>
    %30 = arith.negf %29 : vector<16x256xf32>
    %31 = math.exp %30 : vector<16x256xf32>
    %cst_24 = arith.constant 1.000000e+00 : f32
    %32 = vector.broadcast %cst_24 : f32 to vector<16x256xf32>
    %33 = arith.addf %32, %31 : vector<16x256xf32>
    %34 = arith.divf %32, %33 : vector<16x256xf32>
    %35 = arith.truncf %34 : vector<16x256xf32> to vector<16x256xbf16>
    %c0_25 = arith.constant 0 : index
    %c0_26 = arith.constant 0 : index
    %36 = vector.load %arg11[%c0_25, %c0_26] : memref<16x256xbf16, #tpu.memory_space<vmem>>, vector<16x256xbf16>
    tpu.vector_store %arg11[%c0_25, %c0_26], %35 {strides = array<i32>} : memref<16x256xbf16, #tpu.memory_space<vmem>>, vector<16x256xbf16>,
    return
  }
  func.func @transform_0(%arg0: i32) -> (i32, i32) {
    %c0_i32 = arith.constant 0 : i32
    %c0_i32_0 = arith.constant 0 : i32
    return %arg0, %c0_i32 : i32, i32
  }
  func.func @transform_1(%arg0: i32) -> (i32, i32) {
    %c0_i32 = arith.constant 0 : i32
    %c0_i32_0 = arith.constant 0 : i32
    %c0_i32_1 = arith.constant 0 : i32
    return %c0_i32, %c0_i32_0 : i32, i32
  }
  func.func @transform_2(%arg0: i32) -> (i32, i32) {
    %c0_i32 = arith.constant 0 : i32
    %c0_i32_0 = arith.constant 0 : i32
    %c0_i32_1 = arith.constant 0 : i32
    return %c0_i32, %c0_i32_0 : i32, i32
  }
  func.func @transform_3(%arg0: i32) -> (i32, i32) {
    %c0_i32 = arith.constant 0 : i32
    %c0_i32_0 = arith.constant 0 : i32
    %c0_i32_1 = arith.constant 0 : i32
    return %c0_i32, %c0_i32_0 : i32, i32
  }
  func.func @transform_4(%arg0: i32) -> (i32, i32) {
    %c0_i32 = arith.constant 0 : i32
    %c0_i32_0 = arith.constant 0 : i32
    %c0_i32_1 = arith.constant 0 : i32
    return %c0_i32, %c0_i32_0 : i32, i32
  }
  func.func @transform_5(%arg0: i32) -> (i32, i32) {
    %c0_i32 = arith.constant 0 : i32
    %c0_i32_0 = arith.constant 0 : i32
    %c0_i32_1 = arith.constant 0 : i32
    return %c0_i32, %c0_i32_0 : i32, i32
  }
  func.func @transform_6(%arg0: i32) -> (i32, i32) {
    %c0_i32 = arith.constant 0 : i32
    %c0_i32_0 = arith.constant 0 : i32
    %c0_i32_1 = arith.constant 0 : i32
    return %c0_i32, %c0_i32_0 : i32, i32
  }
  func.func @transform_7(%arg0: i32) -> (i32, i32) {
    %c0_i32 = arith.constant 0 : i32
    %c0_i32_0 = arith.constant 0 : i32
    %c0_i32_1 = arith.constant 0 : i32
    return %c0_i32, %c0_i32_0 : i32, i32
  }
  func.func @transform_8(%arg0: i32) -> (i32, i32) {
    %c0_i32 = arith.constant 0 : i32
    %c0_i32_0 = arith.constant 0 : i32
    %c0_i32_1 = arith.constant 0 : i32
    return %c0_i32, %c0_i32_0 : i32, i32
  }
  func.func @transform_9(%arg0: i32) -> (i32, i32) {
    %c0_i32 = arith.constant 0 : i32
    %c0_i32_0 = arith.constant 0 : i32
    return %arg0, %c0_i32 : i32, i32
  }
  func.func @transform_10(%arg0: i32) -> (i32, i32) {
    %c0_i32 = arith.constant 0 : i32
    %c0_i32_0 = arith.constant 0 : i32
    return %arg0, %c0_i32 : i32, i32
  }
}

module attributes {stable_mosaic.version = 11 : i64} {
  func.func @_sdae_kernel(%arg0: i32, %arg1: memref<16x256xbf16, #tpu.memory_space<vmem>>, %arg2: memref<256x128xbf16, #tpu.memory_space<vmem>>, %arg3: memref<1x128xf32, #tpu.memory_space<vmem>>, %arg4: memref<128x128xbf16, #tpu.memory_space<vmem>>, %arg5: memref<1x128xf32, #tpu.memory_space<vmem>>, %arg6: memref<128x128xbf16, #tpu.memory_space<vmem>>, %arg7: memref<1x128xf32, #tpu.memory_space<vmem>>, %arg8: memref<128x256xbf16, #tpu.memory_space<vmem>>, %arg9: memref<1x256xf32, #tpu.memory_space<vmem>>, %arg10: memref<16x128xbf16, #tpu.memory_space<vmem>>, %arg11: memref<16x256xbf16, #tpu.memory_space<vmem>>) attributes {dimension_semantics = [#tpu.dimension_semantics<parallel>], iteration_bounds = array<i64: 1>, scalar_prefetch = 0 : i64, scratch_operands = 0 : i64, tpu.core_type = #tpu.core_type<tc>, window_params = [{transform_indices = @transform_0, window_bounds = array<i64: 16, 256>}, {pipeline_mode = #tpu.pipeline_mode<synchronous>, transform_indices = @transform_1, window_bounds = array<i64: 256, 128>}, {pipeline_mode = #tpu.pipeline_mode<synchronous>, transform_indices = @transform_2, window_bounds = array<i64: 1, 128>}, {pipeline_mode = #tpu.pipeline_mode<synchronous>, transform_indices = @transform_3, window_bounds = array<i64: 128, 128>}, {pipeline_mode = #tpu.pipeline_mode<synchronous>, transform_indices = @transform_4, window_bounds = array<i64: 1, 128>}, {pipeline_mode = #tpu.pipeline_mode<synchronous>, transform_indices = @transform_5, window_bounds = array<i64: 128, 128>}, {pipeline_mode = #tpu.pipeline_mode<synchronous>, transform_indices = @transform_6, window_bounds = array<i64: 1, 128>}, {pipeline_mode = #tpu.pipeline_mode<synchronous>, transform_indices = @transform_7, window_bounds = array<i64: 128, 256>}, {pipeline_mode = #tpu.pipeline_mode<synchronous>, transform_indices = @transform_8, window_bounds = array<i64: 1, 256>}, {transform_indices = @transform_9, window_bounds = array<i64: 16, 128>}, {transform_indices = @transform_10, window_bounds = array<i64: 16, 256>}]} {
    %c0 = arith.constant 0 : index
    %c0_0 = arith.constant 0 : index
    %0 = vector.load %arg1[%c0, %c0_0] : memref<16x256xbf16, #tpu.memory_space<vmem>>, vector<16x256xbf16>
    %c0_1 = arith.constant 0 : index
    %c0_2 = arith.constant 0 : index
    %1 = vector.load %arg2[%c0_1, %c0_2] : memref<256x128xbf16, #tpu.memory_space<vmem>>, vector<256x128xbf16>
    %cst = arith.constant dense<0.000000e+00> : vector<16x128xf32>
    %2 = tpu.matmul %0, %1, %cst {dimension_numbers = #tpu.dot_dimension_numbers<[1], [0], [0], [1], [0, 0, 1, 1], [], []>} : vector<16x256xbf16>, vector<256x128xbf16>, vector<16x128xf32> -> vector<16x128xf32>
    %c0_3 = arith.constant 0 : index
    %c0_4 = arith.constant 0 : index
    %3 = vector.load %arg3[%c0_3, %c0_4] : memref<1x128xf32, #tpu.memory_space<vmem>>, vector<1x128xf32>
    %4 = vector.broadcast %3 : vector<1x128xf32> to vector<16x128xf32>
    %5 = arith.addf %2, %4 : vector<16x128xf32>
    %cst_5 = arith.constant 0.000000e+00 : f32
    %6 = vector.broadcast %cst_5 : f32 to vector<16x128xf32>
    %7 = arith.maximumf %5, %6 : vector<16x128xf32>
    %8 = arith.truncf %7 : vector<16x128xf32> to vector<16x128xbf16>
    %c0_6 = arith.constant 0 : index
    %c0_7 = arith.constant 0 : index
    %9 = vector.load %arg4[%c0_6, %c0_7] : memref<128x128xbf16, #tpu.memory_space<vmem>>, vector<128x128xbf16>
    %cst_8 = arith.constant dense<0.000000e+00> : vector<16x128xf32>
    %10 = tpu.matmul %8, %9, %cst_8 {dimension_numbers = #tpu.dot_dimension_numbers<[1], [0], [0], [1], [0, 0, 1, 1], [], []>} : vector<16x128xbf16>, vector<128x128xbf16>, vector<16x128xf32> -> vector<16x128xf32>
    %c0_9 = arith.constant 0 : index
    %c0_10 = arith.constant 0 : index
    %11 = vector.load %arg5[%c0_9, %c0_10] : memref<1x128xf32, #tpu.memory_space<vmem>>, vector<1x128xf32>
    %12 = vector.broadcast %11 : vector<1x128xf32> to vector<16x128xf32>
    %13 = arith.addf %10, %12 : vector<16x128xf32>
    %14 = arith.truncf %13 : vector<16x128xf32> to vector<16x128xbf16>
    %c0_11 = arith.constant 0 : index
    %c0_12 = arith.constant 0 : index
    %15 = vector.load %arg10[%c0_11, %c0_12] : memref<16x128xbf16, #tpu.memory_space<vmem>>, vector<16x128xbf16>
    tpu.vector_store %arg10[%c0_11, %c0_12], %14 {strides = array<i32>} : memref<16x128xbf16, #tpu.memory_space<vmem>>, vector<16x128xbf16>,
    %16 = arith.truncf %13 : vector<16x128xf32> to vector<16x128xbf16>
    %c0_13 = arith.constant 0 : index
    %c0_14 = arith.constant 0 : index
    %17 = vector.load %arg6[%c0_13, %c0_14] : memref<128x128xbf16, #tpu.memory_space<vmem>>, vector<128x128xbf16>
    %cst_15 = arith.constant dense<0.000000e+00> : vector<16x128xf32>
    %18 = tpu.matmul %16, %17, %cst_15 {dimension_numbers = #tpu.dot_dimension_numbers<[1], [0], [0], [1], [0, 0, 1, 1], [], []>} : vector<16x128xbf16>, vector<128x128xbf16>, vector<16x128xf32> -> vector<16x128xf32>
    %c0_16 = arith.constant 0 : index
    %c0_17 = arith.constant 0 : index
    %19 = vector.load %arg7[%c0_16, %c0_17] : memref<1x128xf32, #tpu.memory_space<vmem>>, vector<1x128xf32>
    %20 = vector.broadcast %19 : vector<1x128xf32> to vector<16x128xf32>
    %21 = arith.addf %18, %20 : vector<16x128xf32>
    %cst_18 = arith.constant 0.000000e+00 : f32
    %22 = vector.broadcast %cst_18 : f32 to vector<16x128xf32>
    %23 = arith.maximumf %21, %22 : vector<16x128xf32>
    %24 = arith.truncf %23 : vector<16x128xf32> to vector<16x128xbf16>
    %c0_19 = arith.constant 0 : index
    %c0_20 = arith.constant 0 : index
    %25 = vector.load %arg8[%c0_19, %c0_20] : memref<128x256xbf16, #tpu.memory_space<vmem>>, vector<128x256xbf16>
    %cst_21 = arith.constant dense<0.000000e+00> : vector<16x256xf32>
    %26 = tpu.matmul %24, %25, %cst_21 {dimension_numbers = #tpu.dot_dimension_numbers<[1], [0], [0], [1], [0, 0, 1, 1], [], []>} : vector<16x128xbf16>, vector<128x256xbf16>, vector<16x256xf32> -> vector<16x256xf32>
    %c0_22 = arith.constant 0 : index
    %c0_23 = arith.constant 0 : index
    %27 = vector.load %arg9[%c0_22, %c0_23] : memref<1x256xf32, #tpu.memory_space<vmem>>, vector<1x256xf32>
    %28 = vector.broadcast %27 : vector<1x256xf32> to vector<16x256xf32>
    %29 = arith.addf %26, %28 : vector<16x256xf32>
    %30 = arith.negf %29 : vector<16x256xf32>
    %31 = math.exp %30 : vector<16x256xf32>
    %cst_24 = arith.constant 1.000000e+00 : f32
    %32 = vector.broadcast %cst_24 : f32 to vector<16x256xf32>
    %33 = arith.addf %32, %31 : vector<16x256xf32>
    %34 = arith.divf %32, %33 : vector<16x256xf32>
    %35 = arith.truncf %34 : vector<16x256xf32> to vector<16x256xbf16>
    %c0_25 = arith.constant 0 : index
    %c0_26 = arith.constant 0 : index
    %36 = vector.load %arg11[%c0_25, %c0_26] : memref<16x256xbf16, #tpu.memory_space<vmem>>, vector<16x256xbf16>
    tpu.vector_store %arg11[%c0_25, %c0_26], %35 {strides = array<i32>} : memref<16x256xbf16, #tpu.memory_space<vmem>>, vector<16x256xbf16>,
    return
  }
  func.func @transform_0(%arg0: i32) -> (i32, i32) {
    %c0_i32 = arith.constant 0 : i32
    %c0_i32_0 = arith.constant 0 : i32
    return %arg0, %c0_i32 : i32, i32
  }
  func.func @transform_1(%arg0: i32) -> (i32, i32) {
    %c0_i32 = arith.constant 0 : i32
    %c0_i32_0 = arith.constant 0 : i32
    %c0_i32_1 = arith.constant 0 : i32
    return %c0_i32, %c0_i32_0 : i32, i32
  }
  func.func @transform_2(%arg0: i32) -> (i32, i32) {
    %c0_i32 = arith.constant 0 : i32
    %c0_i32_0 = arith.constant 0 : i32
    %c0_i32_1 = arith.constant 0 : i32
    return %c0_i32, %c0_i32_0 : i32, i32
  }
  func.func @transform_3(%arg0: i32) -> (i32, i32) {
    %c0_i32 = arith.constant 0 : i32
    %c0_i32_0 = arith.constant 0 : i32
    %c0_i32_1 = arith.constant 0 : i32
    return %c0_i32, %c0_i32_0 : i32, i32
  }
  func.func @transform_4(%arg0: i32) -> (i32, i32) {
    %c0_i32 = arith.constant 0 : i32
    %c0_i32_0 = arith.constant 0 : i32
    %c0_i32_1 = arith.constant 0 : i32
    return %c0_i32, %c0_i32_0 : i32, i32
  }
  func.func @transform_5(%arg0: i32) -> (i32, i32) {
    %c0_i32 = arith.constant 0 : i32
    %c0_i32_0 = arith.constant 0 : i32
    %c0_i32_1 = arith.constant 0 : i32
    return %c0_i32, %c0_i32_0 : i32, i32
  }
  func.func @transform_6(%arg0: i32) -> (i32, i32) {
    %c0_i32 = arith.constant 0 : i32
    %c0_i32_0 = arith.constant 0 : i32
    %c0_i32_1 = arith.constant 0 : i32
    return %c0_i32, %c0_i32_0 : i32, i32
  }
  func.func @transform_7(%arg0: i32) -> (i32, i32) {
    %c0_i32 = arith.constant 0 : i32
    %c0_i32_0 = arith.constant 0 : i32
    %c0_i32_1 = arith.constant 0 : i32
    return %c0_i32, %c0_i32_0 : i32, i32
  }
  func.func @transform_8(%arg0: i32) -> (i32, i32) {
    %c0_i32 = arith.constant 0 : i32
    %c0_i32_0 = arith.constant 0 : i32
    %c0_i32_1 = arith.constant 0 : i32
    return %c0_i32, %c0_i32_0 : i32, i32
  }
  func.func @transform_9(%arg0: i32) -> (i32, i32) {
    %c0_i32 = arith.constant 0 : i32
    %c0_i32_0 = arith.constant 0 : i32
    return %arg0, %c0_i32 : i32, i32
  }
  func.func @transform_10(%arg0: i32) -> (i32, i32) {
    %c0_i32 = arith.constant 0 : i32
    %c0_i32_0 = arith.constant 0 : i32
    return %arg0, %c0_i32 : i32, i32
  }
}

</mosaic_0001>

<bundles_post_ra>
// kernel: _forward_impl.1
= control target key start
LH: loop header
LB: loop body
LE: loop exit
PB: predicated region body
PF: predicated region fallthrough
CT: control target
= control target key end

     0   :  { %16 = vsyncpa [#allocation3], 0  ;;  %s1378_s0 = inlined_call_operand.vmem [shape: bf16[16,256], index: 0, kind: input, shape index: {}]   ;;  %s1379_s1 = inlined_call_operand.hbm [shape: bf16[256,128], index: 1, kind: input, shape index: {}]   ;;  %s1380_s2 = inlined_call_operand.hbm [shape: f32[1,128], index: 2, kind: input, shape index: {}]   ;;  %s1381_s3 = inlined_call_operand.hbm [shape: bf16[128,128], index: 3, kind: input, shape index: {}]   ;;  %s1382_s4 = inlined_call_operand.hbm [shape: f32[1,128], index: 4, kind: input, shape index: {}]   ;;  %s1383_s5 = inlined_call_operand.vmem [shape: bf16[128,128], index: 5, kind: input, shape index: {}]   ;;  %s1384_s6 = inlined_call_operand.vmem [shape: f32[1,128], index: 6, kind: input, shape index: {}]   ;;  %s1385_s7 = inlined_call_operand.hbm [shape: bf16[128,256], index: 7, kind: input, shape index: {}]   ;;  %s1386_s8 = inlined_call_operand.vmem [shape: f32[1,256], index: 8, kind: input, shape index: {}]   ;;  %s1387_s9 = inlined_call_operand.hbm [shape: bf16[16,128], index: 9, kind: output, shape index: {0}]   ;;  %s1388_s10 = inlined_call_operand.hbm [shape: bf16[16,256], index: 10, kind: output, shape index: {1}]  }
   0x1   :  { %17 = vsyncpa [#allocation6], 0 }
   0x2   :  { %18 = vsyncpa [#allocation9], 0 }
   0x3   :  { %19 = vsyncpa [#allocation4], 0 }
   0x4   :  { %20 = vsyncpa [#allocation13], 0  ;;  %s1156_s13 = smov [#allocation5]   ;;  %s1157_s15 = smov [#allocation8]  }
   0x5   :  { %s41_s14 = sshll.u32 %s1156_s13, 4  ;;  %s63_s16 = sshll.u32 %s1157_s15, 4  ;;  %s42_s14 = int_to_ptr.vmem [resolvable:$true] %s41_s14  ;;  %s64_s16 = int_to_ptr.vmem [resolvable:$true] %s63_s16 }
   0x6   :  { %s992_s19 = scalar_lea.hbm %s1380_s2, 16 }
   0x7   :  { %p993_p0 = scmp.ne.s32.totalorder %s1380_s2, %s992_s19  ;;  %p996_p1 = scmp.lt.u32.totalorder %s992_s19, %s1380_s2 }
   0x9   :  { %p998_p2 = pnand %p996_p1, %p993_p0 }
   0xb   :  { %1001 = shalt.err (!%p998_p2)
}
   0xc   :  { %s1002_s24 = scalar_lea.vmem %s42_s14, 16  ;;  %s1006_s25 = scalar_lea.vmem %s42_s14, 32 }
   0xd   :  { %p1003_p3 = scmp.ne.s32.totalorder %s42_s14, %s1002_s24  ;;  %p1007_p4 = scmp.lt.s32.totalorder %s42_s14, %s42_s14 }
   0xe   :  { %p1008_p5 = scmp.lt.s32.totalorder %s1006_s25, %s1002_s24 }
  0x10   :  { %p1009_p6 = por %p1008_p5, %p1007_p4 }
  0x12   :  { %p1010_p7 = pnand %p1009_p6, %p1003_p3 }
  0x14   :  { %1013 = shalt.err (!%p1010_p7)
}
  0x15   :  { %44 = dma.hbm_to_vmem [thread:$0]  %s1380_s2, 16, %s42_s14, [#allocation6]  }
  0x16   :  { %s1014_s30 = scalar_lea.hbm %s1382_s4, 16 }
  0x17   :  { %p1015_p8 = scmp.ne.s32.totalorder %s1382_s4, %s1014_s30  ;;  %p1018_p9 = scmp.lt.u32.totalorder %s1014_s30, %s1382_s4 }
  0x19   :  { %p1020_p10 = pnand %p1018_p9, %p1015_p8 }
  0x1b   :  { %1023 = shalt.err (!%p1020_p10)
}
  0x1c   :  { %s1024_s17 = scalar_lea.vmem %s64_s16, 16  ;;  %s1028_s18 = scalar_lea.vmem %s64_s16, 32 }
  0x1d   :  { %p1025_p11 = scmp.ne.s32.totalorder %s64_s16, %s1024_s17  ;;  %p1029_p12 = scmp.lt.s32.totalorder %s64_s16, %s64_s16 }
  0x1e   :  { %p1030_p13 = scmp.lt.s32.totalorder %s1028_s18, %s1024_s17 }
  0x20   :  { %p1031_p0 = por %p1030_p13, %p1029_p12 }
  0x22   :  { %p1032_p1 = pnand %p1031_p0, %p1025_p11 }
  0x24   :  { %1035 = shalt.err (!%p1032_p1)
}
  0x25   :  { %66 = dma.hbm_to_vmem [thread:$0]  %s1382_s4, 16, %s64_s16, [#allocation9]  }
  0x26   :  { %s1158_s19 = smov [#allocation2]   ;;  %s1036_s23 = scalar_lea.hbm %s1379_s1, 2048 }
  0x27   :  { %s28_s20 = sshll.u32 %s1158_s19, 4  ;;  %p1037_p2 = scmp.ne.s32.totalorder %s1379_s1, %s1036_s23  ;;  %s29_s20 = int_to_ptr.vmem [resolvable:$true] %s28_s20 }
  0x28   :  { %p1040_p3 = scmp.lt.u32.totalorder %s1036_s23, %s1379_s1 }
  0x2a   :  { %p1042_p4 = pnand %p1040_p3, %p1037_p2 }
  0x2c   :  { %1045 = shalt.err (!%p1042_p4)
}
  0x2d   :  { %s1046_s28 = scalar_lea.vmem %s29_s20, 2048  ;;  %p1051_p6 = scmp.lt.s32.totalorder %s29_s20, %s29_s20 }
  0x2e   :  { %p1047_p5 = scmp.ne.s32.totalorder %s29_s20, %s1046_s28  ;;  %p1052_p7 = scmp.lt.s32.totalorder %s1046_s28, %s1046_s28 }
  0x30   :  { %p1053_p8 = por %p1052_p7, %p1051_p6 }
  0x32   :  { %p1054_p9 = pnand %p1053_p8, %p1047_p5 }
  0x34   :  { %1057 = shalt.err (!%p1054_p9)
}
  0x35   :  { %s1159_s4 = smov 64   ;;  %s1160_s16 = smov 4  }
  0x36   :  { %34 = dma.hbm_to_vmem [thread:$0]  %s1379_s1, 2048, %s29_s20, [#allocation3], %s1159_s4, %s1159_s4, %s1160_s16  }
  0x37   :  { %s1161_s11 = smov [#allocation7]   ;;  %s1162_s13 = smov [#allocation10]  }
  0x38   :  { %s50_s12 = sshll.u32 %s1161_s11, 4  ;;  %s76_s15 = sshll.u32 %s1162_s13, 4  ;;  %s51_s12 = int_to_ptr.vmem [resolvable:$true] %s50_s12  ;;  %s77_s15 = int_to_ptr.vmem [resolvable:$true] %s76_s15 }
  0x39   :  { %s1058_s2 = scalar_lea.hbm %s1381_s3, 1024 }
  0x3a   :  { %p1059_p10 = scmp.ne.s32.totalorder %s1381_s3, %s1058_s2  ;;  %p1062_p11 = scmp.lt.u32.totalorder %s1058_s2, %s1381_s3 }
  0x3c   :  { %p1064_p12 = pnand %p1062_p11, %p1059_p10 }
  0x3e   :  { %1067 = shalt.err (!%p1064_p12)
}
  0x3f   :  { %s1068_s1 = scalar_lea.vmem %s51_s12, 1024  ;;  %p1073_p0 = scmp.lt.s32.totalorder %s51_s12, %s51_s12 }
  0x40   :  { %p1069_p13 = scmp.ne.s32.totalorder %s51_s12, %s1068_s1  ;;  %p1074_p1 = scmp.lt.s32.totalorder %s1068_s1, %s1068_s1 }
  0x42   :  { %p1075_p2 = por %p1074_p1, %p1073_p0 }
  0x44   :  { %p1076_p3 = pnand %p1075_p2, %p1069_p13 }
  0x46   :  { %1079 = shalt.err (!%p1076_p3)
}
  0x47   :  { %56 = dma.hbm_to_vmem [thread:$0]  %s1381_s3, 1024, %s51_s12, [#allocation6], %s1159_s4, %s1159_s4, %s1160_s16  }
  0x48   :  { %s1080_s26 = scalar_lea.hbm %s1385_s7, 2048 }
  0x49   :  { %p1081_p4 = scmp.ne.s32.totalorder %s1385_s7, %s1080_s26  ;;  %p1084_p5 = scmp.lt.u32.totalorder %s1080_s26, %s1385_s7 }
  0x4b   :  { %p1086_p6 = pnand %p1084_p5, %p1081_p4 }
  0x4d   :  { %1089 = shalt.err (!%p1086_p6)
}
  0x4e   :  { %s1090_s11 = scalar_lea.vmem %s77_s15, 2048  ;;  %p1095_p8 = scmp.lt.s32.totalorder %s77_s15, %s77_s15 }
  0x4f   :  { %p1091_p7 = scmp.ne.s32.totalorder %s77_s15, %s1090_s11  ;;  %p1096_p9 = scmp.lt.s32.totalorder %s1090_s11, %s1090_s11 }
  0x51   :  { %p1097_p10 = por %p1096_p9, %p1095_p8 }
  0x53   :  { %p1098_p11 = pnand %p1097_p10, %p1091_p7 }
  0x55   :  { %1101 = shalt.err (!%p1098_p11)
}
  0x56   :  { %s1163_s3 = smov 128   ;;  %s1164_s12 = smov 8  }
  0x57   :  { %82 = dma.hbm_to_vmem [thread:$0]  %s1385_s7, 2048, %s77_s15, [#allocation9], %s1163_s3, %s1163_s3, %s1164_s12  }
  0x58   :  { %1146 = dma.done.wait [#allocation3], 2048  }
  0x59   :  { %1147 = vsyncadd [#allocation3], 4294965248 }
  0x5a   :  { %1148 = dma.done.wait [#allocation6], 1040  }
  0x5b   :  { %1149 = vsyncadd [#allocation6], 4294966256 }
  0x5c   :  { %1150 = dma.done.wait [#allocation9], 2064  }
  0x5d   :  { %1151 = vsyncadd [#allocation9], 4294965232  ;;  %v1165_v0 = vmov 0.0   ;;  %v917_v1 = vld [vmem:[#allocation2 + $0x40] sm:$0xff]   ;;  %v919_v3 = vld [vmem:[#allocation2 + $0x48] sm:$0xff]   ;;  %vm1166_vm0 = vmmov 0  }
  0x5e   :  { %863 = vmatprep.subr.bf16.mxu1 %v1165_v0  ;;  %v918_v2 = vld [vmem:[#allocation2] sm:$0xff]   ;;  %823 = vmatprep.subr.bf16.mxu0 %v917_v1  ;;  %v920_v4 = vld [vmem:[#allocation2 + $0x8] sm:$0xff]   ;;  %v921_v5 = vld [vmem:[#allocation2 + $0x50] sm:$0xff]   ;;  %s1168_s17 = smov [#allocation11]  }
  0x5f   :  { %824 = vmatpush3.bf16.msra.mxu0 %v918_v2  ;;  %v922_v6 = vld [vmem:[#allocation2 + $0x10] sm:$0xff]   ;;  %v923_v7 = vld [vmem:[#allocation2 + $0x58] sm:$0xff]   ;;  %v925_v9 = vld [vmem:[#allocation2 + $0x60] sm:$0xff]   ;;  %879 = vmatprep.mubr.msk.bf16.mxu1 %vm1166_vm0, %v1165_v0  ;;  %s723_s7 = sshll.u32 %s1168_s17, 4  ;;  %s724_s7 = int_to_ptr.vmem [resolvable:$true] %s723_s7 }
  0x60   :  { %825 = vmatprep.subr.bf16.mxu0 %v919_v3  ;;  %v924_v8 = vld [vmem:[#allocation2 + $0x18] sm:$0xff]   ;;  %v926_v10 = vld [vmem:[#allocation2 + $0x20] sm:$0xff]   ;;  %v927_v11 = vld [vmem:[#allocation2 + $0x68] sm:$0xff]   ;;  %s1102_s15 = scalar_lea.vmem %s724_s7, 128  ;;  %p1107_p13 = scmp.lt.s32.totalorder %s724_s7, %s724_s7 }
  0x61   :  { %v928_v12 = vld [vmem:[#allocation2 + $0x28] sm:$0xff]   ;;  %v935_v13 = vld [vmem:[%s1378_s0 + $0x4] ss:$8 sps:$4 sm:$0xff]   ;;  %v933_v22 = vld [vmem:[%s1378_s0] ss:$8 sps:$4 sm:$0xff]   ;;  %p1103_p12 = scmp.ne.s32.totalorder %s724_s7, %s1102_s15  ;;  %p1108_p0 = scmp.lt.s32.totalorder %s1102_s15, %s1102_s15 }
  0x62   :  { %v936_v14 = vld [vmem:[#allocation7] sm:$0xff]   ;;  %v929_v15 = vld [vmem:[#allocation2 + $0x70] sm:$0xff]   ;;  %280 = vmatprep.mubr.bf16.mxu0 %v935_v13  ;;  %v931_v18 = vld [vmem:[#allocation2 + $0x78] sm:$0xff]  }
  0x63   :  { %826 = vmatpush3.bf16.msra.mxu0 %v920_v4  ;;  %864 = vmatpush3.bf16.msra.mxu1 %v936_v14  ;;  %v937_v16 = vld [vmem:[#allocation7 + $0x8] sm:$0xff]   ;;  %v938_v19 = vld [vmem:[#allocation7 + $0x10] sm:$0xff]   ;;  %v939_v21 = vld [vmem:[#allocation7 + $0x18] sm:$0xff]   ;;  %p1109_p1 = por %p1108_p0, %p1107_p13 }
  0x64   :  { %827 = vmatprep.subr.bf16.mxu0 %v921_v5  ;;  %v930_v17 = vld [vmem:[#allocation2 + $0x30] sm:$0xff]   ;;  %865 = vmatprep.subr.bf16.mxu1 %v1165_v0  ;;  %v932_v20 = vld [vmem:[#allocation2 + $0x38] sm:$0xff]   ;;  %v940_v23 = vld [vmem:[#allocation7 + $0x20] sm:$0xff]  }
  0x65   :  { %v941_v24 = vld [vmem:[#allocation7 + $0x28] sm:$0xff]   ;;  %v942_v25 = vld [vmem:[#allocation7 + $0x30] sm:$0xff]   ;;  %v943_v26 = vld [vmem:[#allocation7 + $0x38] sm:$0xff]   ;;  %p1110_p2 = pnand %p1109_p1, %p1103_p12 }
  0x66   :  { %v944_v27 = vld [vmem:[%s1383_s5] sm:$0xff]   ;;  %v945_v28 = vld [vmem:[%s1383_s5 + $0x8] sm:$0xff]   ;;  %v946_v29 = vld [vmem:[%s1383_s5 + $0x10] sm:$0xff]  }
  0x67   :  { %828 = vmatpush3.bf16.msra.mxu0 %v922_v6  ;;  %866 = vmatpush3.bf16.msra.mxu1 %v937_v16  ;;  %v947_v30 = vld [vmem:[%s1383_s5 + $0x18] sm:$0xff]   ;;  %v948_v31 = vld [vmem:[%s1383_s5 + $0x20] sm:$0xff]   ;;  %v949_v32 = vld [vmem:[%s1383_s5 + $0x28] sm:$0xff]  }
  0x68   :  { %829 = vmatprep.subr.bf16.mxu0 %v923_v7  ;;  %867 = vmatprep.subr.bf16.mxu1 %v1165_v0  ;;  %v753_v34 = vld [vmem:[#allocation5] ss:$0 sm:$0xff]  ;;  %v951_v46 = vld [vmem:[%s1383_s5 + $0x38] sm:$0xff]   ;;  %v955_v50 = vld [vmem:[#allocation10 + $0x10] ss:$8 sps:$4 sm:$0xff]   ;;  %v1167_v7 = vmov 0  }
  0x69   :  { %v950_v45 = vld [vmem:[%s1383_s5 + $0x30] sm:$0xff]   ;;  %v954_v48 = vld [vmem:[#allocation10 + $0x4] ss:$8 sps:$4 sm:$0xff]   ;;  %v961_v54 = vld [vmem:[#allocation10 + $0x30] ss:$8 sps:$4 sm:$0xff]  }
  0x6a   :  { %v952_v47 = vld [vmem:[#allocation10] ss:$8 sps:$4 sm:$0xff]   ;;  %v957_v49 = vld [vmem:[#allocation10 + $0x14] ss:$8 sps:$4 sm:$0xff]   ;;  %v960_v51 = vld [vmem:[#allocation10 + $0x24] ss:$8 sps:$4 sm:$0xff]  }
  0x6b   :  { %830 = vmatpush3.bf16.msra.mxu0 %v924_v8  ;;  %868 = vmatpush3.bf16.msra.mxu1 %v938_v19  ;;  %v958_v52 = vld [vmem:[#allocation10 + $0x20] ss:$8 sps:$4 sm:$0xff]   ;;  %v963_v53 = vld [vmem:[#allocation10 + $0x34] ss:$8 sps:$4 sm:$0xff]   ;;  %v966_v55 = vld [vmem:[#allocation10 + $0x44] ss:$8 sps:$4 sm:$0xff]  }
  0x6c   :  { %831 = vmatprep.subr.bf16.mxu0 %v925_v9  ;;  %869 = vmatprep.subr.bf16.mxu1 %v1165_v0  ;;  %v964_v56 = vld [vmem:[#allocation10 + $0x40] ss:$8 sps:$4 sm:$0xff]   ;;  %v969_v57 = vld [vmem:[#allocation10 + $0x54] ss:$8 sps:$4 sm:$0xff]   ;;  %v967_v58 = vld [vmem:[#allocation10 + $0x50] ss:$8 sps:$4 sm:$0xff]  }
  0x6d   :  { %v772_v59 = vld [vmem:[#allocation8] ss:$0 sm:$0xff]  ;;  %v972_v3 = vld [vmem:[#allocation10 + $0x64] ss:$8 sps:$4 sm:$0xff]   ;;  %v970_v4 = vld [vmem:[#allocation10 + $0x60] ss:$8 sps:$4 sm:$0xff]  }
  0x6e   :  { %v975_v5 = vld [vmem:[#allocation10 + $0x74] ss:$8 sps:$4 sm:$0xff]   ;;  %v973_v6 = vld [vmem:[#allocation10 + $0x70] ss:$8 sps:$4 sm:$0xff]   ;;  %v783_v8 = vld [vmem:[%s1384_s6] ss:$0 sm:$0xff] }
  0x6f   :  { %832 = vmatpush3.bf16.msra.mxu0 %v926_v10  ;;  %870 = vmatpush3.bf16.msra.mxu1 %v939_v21 }
  0x70   :  { %833 = vmatprep.subr.bf16.mxu0 %v927_v11  ;;  %871 = vmatprep.subr.bf16.mxu1 %v1165_v0 }
  0x73   :  { %834 = vmatpush3.bf16.msra.mxu0 %v928_v12  ;;  %872 = vmatpush3.bf16.msra.mxu1 %v940_v23 }
  0x74   :  { %835 = vmatprep.subr.bf16.mxu0 %v929_v15  ;;  %873 = vmatprep.subr.bf16.mxu1 %v1165_v0 }
  0x77   :  { %836 = vmatpush3.bf16.msra.mxu0 %v930_v17  ;;  %874 = vmatpush3.bf16.msra.mxu1 %v941_v24 }
  0x78   :  { %837 = vmatprep.subr.bf16.mxu0 %v931_v18  ;;  %875 = vmatprep.subr.bf16.mxu1 %v1165_v0 }
  0x7b   :  { %838 = vmatpush3.bf16.msra.mxu0 %v932_v20  ;;  %876 = vmatpush3.bf16.msra.mxu1 %v942_v25 }
  0x7c   :  { %883 = vmatprep.subr.bf16.mxu0 %v1165_v0  ;;  %877 = vmatprep.subr.bf16.mxu1 %v1165_v0 }
  0x7e   :  { %281 = vmatmul.mubr.bf16.vlgmr.msra.gmra.mrb[0].mxu0 %v933_v22 }
  0x7f   :  { %878 = vmatpush3.bf16.msra.mxu1 %v943_v26  ;;  %899 = vmatprep.mubr.msk.bf16.mxu0 %vm1166_vm0, %v1165_v0 }
  0x80   :  { %884 = vmatpush3.bf16.msra.mxu0 %v944_v27  ;;  %637 = vmatprep.subr.bf16.mxu1 %v954_v48 }
  0x81   :  { %885 = vmatprep.subr.bf16.mxu0 %v1165_v0 }
  0x84   :  { %886 = vmatpush3.bf16.msra.mxu0 %v945_v28 }
  0x85   :  { %887 = vmatprep.subr.bf16.mxu0 %v1165_v0 }
  0x88   :  { %888 = vmatpush3.bf16.msra.mxu0 %v946_v29 }
  0x89   :  { %889 = vmatprep.subr.bf16.mxu0 %v1165_v0 }
  0x8c   :  { %890 = vmatpush3.bf16.msra.mxu0 %v947_v30 }
  0x8d   :  { %891 = vmatprep.subr.bf16.mxu0 %v1165_v0 }
  0x90   :  { %892 = vmatpush3.bf16.msra.mxu0 %v948_v31 }
  0x91   :  { %893 = vmatprep.subr.bf16.mxu0 %v1165_v0 }
  0x94   :  { %894 = vmatpush3.bf16.msra.mxu0 %v949_v32 }
  0x95   :  { %895 = vmatprep.subr.bf16.mxu0 %v1165_v0 }
  0x98   :  { %896 = vmatpush3.bf16.msra.mxu0 %v950_v45 }
  0x99   :  { %897 = vmatprep.subr.bf16.mxu0 %v1165_v0 }
  0x9c   :  { %898 = vmatpush3.bf16.msra.mxu0 %v951_v46 }
 0x151   :  { %v839_v33 = vpop.f32.mrb[0].mxu0 }
 0x152   :  { %v840_v35 = vpop.f32.mrb[1].mxu0 }
 0x153   :  { %v841_v36 = vadd.f32 %v840_v35, %v839_v33  ;;  %v842_v37 = vpop.f32.mrb[2].mxu0 }
 0x154   :  { %v843_v38 = vpop.f32.mrb[3].mxu0 }
 0x155   :  { %v283_v39 = vadd.f32 %v841_v36, %v753_v34  ;;  %v844_v40 = vadd.f32 %v843_v38, %v842_v37 }
 0x157   :  { %v286_v41 = vadd.f32 %v844_v40, %v753_v34  ;;  %v289_v42 = vmax.f32 %v283_v39, 0.0 }
 0x159   :  { %v290_v43 = vmax.f32 %v286_v41, 0.0 }
 0x15b   :  { %v291_v44 = vpack.c.bf16 %v290_v43, %v289_v42 }
 0x15d   :  { %880 = vmatmul.mubr.bf16.vlgmr.msra.gmra.mrb[0].mxu1 %v291_v44 }
 0x15e   :  { %638 = vmatpush1.bf16.msra.mxu1 %v952_v47  ;;  %669 = vmatprep.mubr.bf16.mxu1 %v1167_v7 }
 0x15f   :  { %639 = vmatprep.subr.bf16.mxu1 %v957_v49 }
 0x162   :  { %640 = vmatpush1.bf16.msra.mxu1 %v955_v50 }
 0x163   :  { %641 = vmatprep.subr.bf16.mxu1 %v960_v51 }
 0x166   :  { %642 = vmatpush1.bf16.msra.mxu1 %v958_v52 }
 0x167   :  { %643 = vmatprep.subr.bf16.mxu1 %v963_v53 }
 0x16a   :  { %644 = vmatpush1.bf16.msra.mxu1 %v961_v54 }
 0x16b   :  { %645 = vmatprep.subr.bf16.mxu1 %v966_v55 }
 0x16e   :  { %646 = vmatpush1.bf16.msra.mxu1 %v964_v56 }
 0x16f   :  { %647 = vmatprep.subr.bf16.mxu1 %v969_v57 }
 0x172   :  { %648 = vmatpush1.bf16.msra.mxu1 %v967_v58 }
 0x173   :  { %649 = vmatprep.subr.bf16.mxu1 %v972_v3 }
 0x176   :  { %650 = vmatpush1.bf16.msra.mxu1 %v970_v4 }
 0x177   :  { %651 = vmatprep.subr.bf16.mxu1 %v975_v5 }
 0x17a   :  { %652 = vmatpush1.bf16.msra.mxu1 %v973_v6 }
 0x230   :  { %v397_v60 = vpop.f32.mrb[0].mxu1 }
 0x231   :  { %v881_v61 = vpop.f32.mrb[1].mxu1  ;;  %v398_v63 = vadd.f32 %v772_v59, %v397_v60 }
 0x232   :  { %v400_v62 = vpop.f32.mrb[2].mxu1 }
 0x233   :  { %v401_v0 = vadd.f32 %v772_v59, %v400_v62  ;;  %v882_v1 = vpop.f32.mrb[3].mxu1 }
 0x235   :  { %v404_v2 = vpack.c.bf16 %v401_v0, %v398_v63 }
 0x237   :  { %822 = vst [vmem:[#allocation11] sm:$0xff] %v404_v2   ;;  %900 = vmatmul.mubr.bf16.vlgmr.msra.gmra.mrb[4].mxu0 %v404_v2 }
 0x30a   :  { %v519_v9 = vpop.f32.mrb[4].mxu0 }
 0x30b   :  { %v520_v10 = vadd.f32 %v783_v8, %v519_v9  ;;  %v901_v11 = vpop.f32.mrb[5].mxu0 }
 0x30c   :  { %v522_v12 = vpop.f32.mrb[6].mxu0 }
 0x30d   :  { %v523_v13 = vadd.f32 %v783_v8, %v522_v12  ;;  %v902_v14 = vpop.f32.mrb[7].mxu0  ;;  %v526_v15 = vmax.f32 %v520_v10, 0.0 }
 0x30f   :  { %v527_v16 = vmax.f32 %v523_v13, 0.0 }
 0x311   :  { %v528_v17 = vpack.c.bf16 %v527_v16, %v526_v15 }
 0x313   :  { %670 = vmatmul.mubr.bf16.vlgmr.msra.gmra.mrb[4].mxu1 %v528_v17 }
 0x314   :  { %1113 = shalt.err (!%p1110_p2)
}
 0x315   :  { %s1114_s2 = scalar_lea.hbm %s1387_s9, 128 }
 0x316   :  { %p1115_p3 = scmp.ne.s32.totalorder %s1387_s9, %s1114_s2  ;;  %p1118_p4 = scmp.lt.u32.totalorder %s1114_s2, %s1387_s9 }
 0x318   :  { %p1120_p5 = pnand %p1118_p4, %p1115_p3 }
 0x31a   :  { %1123 = shalt.err (!%p1120_p5)
}
 0x31b   :  { %729 = dma.vmem_to_hbm [thread:$0]  %s724_s7, 128, %s1387_s9, [#allocation4], %s1159_s4, %s1159_s4, %s1160_s16   ;;  %v547_v18 = vlaneseq }
 0x31c   :  { %v545_v21 = vld [vmem:[%s1386_s8] sm:$0x3]  ;;  %s1169_s8 = smov [#allocation12]  }
 0x31d   :  { %v548_v19 = vshrl.u32 %v547_v18, 7  ;;  %s735_s9 = sshll.u32 %s1169_s8, 4  ;;  %s736_s9 = int_to_ptr.vmem [resolvable:$true] %s735_s9 }
 0x31e   :  { %s1124_s4 = scalar_lea.vmem %s736_s9, 256  ;;  %p1129_p7 = scmp.lt.s32.totalorder %s736_s9, %s736_s9 }
 0x31f   :  { %v549_v20 = vsub.s32 0, %v548_v19  ;;  %v553_v22 = vsub.s32 1, %v548_v19  ;;  %p1125_p6 = scmp.ne.s32.totalorder %s736_s9, %s1124_s4  ;;  %p1130_p8 = scmp.lt.s32.totalorder %s1124_s4, %s1124_s4 }
 0x321   :  { %v550_v23 = vrot.slane %v545_v21, %v549_v20  ;;  %v554_v24 = vrot.slane %v545_v21, %v553_v22  ;;  %p1131_p9 = por %p1130_p8, %p1129_p7 }
 0x323   :  { %p1132_p10 = pnand %p1131_p9, %p1125_p6 }
 0x3e6   :  { %v671_v25 = vpop.f32.mrb[4].mxu1 }
 0x3e7   :  { %v672_v26 = vadd.f32 %v671_v25, %v550_v23  ;;  %v673_v27 = vpop.f32.mrb[5].mxu1 }
 0x3e8   :  { %v674_v28 = vadd.f32 %v673_v27, %v554_v24  ;;  %v675_v29 = vpop.f32.mrb[6].mxu1 }
 0x3e9   :  { %v808_v30 = vmul.f32 -1.442695, %v672_v26  ;;  %v676_v31 = vadd.f32 %v675_v29, %v550_v23  ;;  %v677_v32 = vpop.f32.mrb[7].mxu1 }
 0x3ea   :  { %v809_v33 = vmul.f32 -1.442695, %v674_v28  ;;  %v678_v34 = vadd.f32 %v677_v32, %v554_v24 }
 0x3eb   :  { %976 = vpow2.f32 %v808_v30  ;;  %v810_v35 = vmul.f32 -1.442695, %v676_v31 }
 0x3ec   :  { %978 = vpow2.f32 %v809_v33  ;;  %v811_v36 = vmul.f32 -1.442695, %v678_v34 }
 0x3ed   :  { %980 = vpow2.f32 %v810_v35 }
 0x3ee   :  { %982 = vpow2.f32 %v811_v36 }
 0x3f5   :  { %v977_v37 = vpop.eup %976 }
 0x3f6   :  { %v979_v38 = vpop.eup %978  ;;  %v692_v39 = vadd.f32 1.0, %v977_v37 }
 0x3f7   :  { %v981_v40 = vpop.eup %980  ;;  %v693_v41 = vadd.f32 1.0, %v979_v38 }
 0x3f8   :  { %v983_v42 = vpop.eup %982  ;;  %984 = vrcp.f32 %v692_v39  ;;  %v694_v43 = vadd.f32 1.0, %v981_v40 }
 0x3f9   :  { %986 = vrcp.f32 %v693_v41  ;;  %v695_v44 = vadd.f32 1.0, %v983_v42 }
 0x3fa   :  { %988 = vrcp.f32 %v694_v43 }
 0x3fb   :  { %990 = vrcp.f32 %v695_v44 }
 0x402   :  { %v985_v45 = vpop.eup %984 }
 0x403   :  { %v987_v46 = vpop.eup %986 }
 0x404   :  { %v989_v47 = vpop.eup %988  ;;  %v816_v48 = vpack.c.bf16 %v987_v46, %v985_v45 }
 0x405   :  { %v991_v49 = vpop.eup %990 }
 0x406   :  { %v817_v50 = vpack.c.bf16 %v991_v49, %v989_v47  ;;  %716 = vst [vmem:[#allocation12] sm:$0xff] %v816_v48 }
 0x408   :  { %717 = vst [vmem:[#allocation12 + $0x8] sm:$0xff] %v817_v50 }
 0x409   :  { %1135 = shalt.err (!%p1132_p10)
}
 0x40a   :  { %s1136_s25 = scalar_lea.hbm %s1388_s10, 256 }
 0x40b   :  { %p1137_p11 = scmp.ne.s32.totalorder %s1388_s10, %s1136_s25  ;;  %p1140_p12 = scmp.lt.u32.totalorder %s1136_s25, %s1388_s10 }
 0x40d   :  { %p1142_p13 = pnand %p1140_p12, %p1137_p11 }
 0x40f   :  { %1145 = shalt.err (!%p1142_p13)
}
 0x410   :  { %741 = dma.vmem_to_hbm [thread:$0]  %s736_s9, 256, %s1388_s10, [#allocation13], %s1163_s3, %s1163_s3, %s1164_s12  }
 0x411   :  { %1152 = dma.done.wait [#allocation4], 128  }
 0x412   :  { %1153 = vsyncadd [#allocation4], 4294967168 }
 0x413   :  { %1154 = dma.done.wait [#allocation13], 256  }
 0x414   :  { %1155 = vsyncadd [#allocation13], 4294967040 }
 0x415   :  { %748 = vsyncpa [#allocation3], 1 }
 0x416   :  { %749 = vsyncpa [#allocation6], 1 }
 0x417   :  { %750 = vsyncpa [#allocation9], 1 }
 0x418   :  { %751 = vsyncpa [#allocation4], 1 }
 0x419   :  { %752 = vsyncpa [#allocation13], 1 }

// kernel: _forward_impl.1
= control target key start
LH: loop header
LB: loop body
LE: loop exit
PB: predicated region body
PF: predicated region fallthrough
CT: control target
= control target key end

     0   :  { %16 = vsyncpa [#allocation3], 0  ;;  %s1378_s0 = inlined_call_operand.vmem [shape: bf16[16,256], index: 0, kind: input, shape index: {}]   ;;  %s1379_s1 = inlined_call_operand.hbm [shape: bf16[256,128], index: 1, kind: input, shape index: {}]   ;;  %s1380_s2 = inlined_call_operand.hbm [shape: f32[1,128], index: 2, kind: input, shape index: {}]   ;;  %s1381_s3 = inlined_call_operand.hbm [shape: bf16[128,128], index: 3, kind: input, shape index: {}]   ;;  %s1382_s4 = inlined_call_operand.hbm [shape: f32[1,128], index: 4, kind: input, shape index: {}]   ;;  %s1383_s5 = inlined_call_operand.vmem [shape: bf16[128,128], index: 5, kind: input, shape index: {}]   ;;  %s1384_s6 = inlined_call_operand.vmem [shape: f32[1,128], index: 6, kind: input, shape index: {}]   ;;  %s1385_s7 = inlined_call_operand.hbm [shape: bf16[128,256], index: 7, kind: input, shape index: {}]   ;;  %s1386_s8 = inlined_call_operand.vmem [shape: f32[1,256], index: 8, kind: input, shape index: {}]   ;;  %s1387_s9 = inlined_call_operand.hbm [shape: bf16[16,128], index: 9, kind: output, shape index: {0}]   ;;  %s1388_s10 = inlined_call_operand.hbm [shape: bf16[16,256], index: 10, kind: output, shape index: {1}]  }
   0x1   :  { %17 = vsyncpa [#allocation6], 0 }
   0x2   :  { %18 = vsyncpa [#allocation9], 0 }
   0x3   :  { %19 = vsyncpa [#allocation4], 0 }
   0x4   :  { %20 = vsyncpa [#allocation13], 0  ;;  %s1156_s13 = smov [#allocation5]   ;;  %s1157_s15 = smov [#allocation8]  }
   0x5   :  { %s41_s14 = sshll.u32 %s1156_s13, 4  ;;  %s63_s16 = sshll.u32 %s1157_s15, 4  ;;  %s42_s14 = int_to_ptr.vmem [resolvable:$true] %s41_s14  ;;  %s64_s16 = int_to_ptr.vmem [resolvable:$true] %s63_s16 }
   0x6   :  { %s992_s19 = scalar_lea.hbm %s1380_s2, 16 }
   0x7   :  { %p993_p0 = scmp.ne.s32.totalorder %s1380_s2, %s992_s19  ;;  %p996_p1 = scmp.lt.u32.totalorder %s992_s19, %s1380_s2 }
   0x9   :  { %p998_p2 = pnand %p996_p1, %p993_p0 }
   0xb   :  { %1001 = shalt.err (!%p998_p2)
}
   0xc   :  { %s1002_s24 = scalar_lea.vmem %s42_s14, 16  ;;  %s1006_s25 = scalar_lea.vmem %s42_s14, 32 }
   0xd   :  { %p1003_p3 = scmp.ne.s32.totalorder %s42_s14, %s1002_s24  ;;  %p1007_p4 = scmp.lt.s32.totalorder %s42_s14, %s42_s14 }
   0xe   :  { %p1008_p5 = scmp.lt.s32.totalorder %s1006_s25, %s1002_s24 }
  0x10   :  { %p1009_p6 = por %p1008_p5, %p1007_p4 }
  0x12   :  { %p1010_p7 = pnand %p1009_p6, %p1003_p3 }
  0x14   :  { %1013 = shalt.err (!%p1010_p7)
}
  0x15   :  { %44 = dma.hbm_to_vmem [thread:$0]  %s1380_s2, 16, %s42_s14, [#allocation6]  }
  0x16   :  { %s1014_s30 = scalar_lea.hbm %s1382_s4, 16 }
  0x17   :  { %p1015_p8 = scmp.ne.s32.totalorder %s1382_s4, %s1014_s30  ;;  %p1018_p9 = scmp.lt.u32.totalorder %s1014_s30, %s1382_s4 }
  0x19   :  { %p1020_p10 = pnand %p1018_p9, %p1015_p8 }
  0x1b   :  { %1023 = shalt.err (!%p1020_p10)
}
  0x1c   :  { %s1024_s17 = scalar_lea.vmem %s64_s16, 16  ;;  %s1028_s18 = scalar_lea.vmem %s64_s16, 32 }
  0x1d   :  { %p1025_p11 = scmp.ne.s32.totalorder %s64_s16, %s1024_s17  ;;  %p1029_p12 = scmp.lt.s32.totalorder %s64_s16, %s64_s16 }
  0x1e   :  { %p1030_p13 = scmp.lt.s32.totalorder %s1028_s18, %s1024_s17 }
  0x20   :  { %p1031_p0 = por %p1030_p13, %p1029_p12 }
  0x22   :  { %p1032_p1 = pnand %p1031_p0, %p1025_p11 }
  0x24   :  { %1035 = shalt.err (!%p1032_p1)
}
  0x25   :  { %66 = dma.hbm_to_vmem [thread:$0]  %s1382_s4, 16, %s64_s16, [#allocation9]  }
  0x26   :  { %s1158_s19 = smov [#allocation2]   ;;  %s1036_s23 = scalar_lea.hbm %s1379_s1, 2048 }
  0x27   :  { %s28_s20 = sshll.u32 %s1158_s19, 4  ;;  %p1037_p2 = scmp.ne.s32.totalorder %s1379_s1, %s1036_s23  ;;  %s29_s20 = int_to_ptr.vmem [resolvable:$true] %s28_s20 }
  0x28   :  { %p1040_p3 = scmp.lt.u32.totalorder %s1036_s23, %s1379_s1 }
  0x2a   :  { %p1042_p4 = pnand %p1040_p3, %p1037_p2 }
  0x2c   :  { %1045 = shalt.err (!%p1042_p4)
}
  0x2d   :  { %s1046_s28 = scalar_lea.vmem %s29_s20, 2048  ;;  %p1051_p6 = scmp.lt.s32.totalorder %s29_s20, %s29_s20 }
  0x2e   :  { %p1047_p5 = scmp.ne.s32.totalorder %s29_s20, %s1046_s28  ;;  %p1052_p7 = scmp.lt.s32.totalorder %s1046_s28, %s1046_s28 }
  0x30   :  { %p1053_p8 = por %p1052_p7, %p1051_p6 }
  0x32   :  { %p1054_p9 = pnand %p1053_p8, %p1047_p5 }
  0x34   :  { %1057 = shalt.err (!%p1054_p9)
}
  0x35   :  { %s1159_s4 = smov 64   ;;  %s1160_s16 = smov 4  }
  0x36   :  { %34 = dma.hbm_to_vmem [thread:$0]  %s1379_s1, 2048, %s29_s20, [#allocation3], %s1159_s4, %s1159_s4, %s1160_s16  }
  0x37   :  { %s1161_s11 = smov [#allocation7]   ;;  %s1162_s13 = smov [#allocation10]  }
  0x38   :  { %s50_s12 = sshll.u32 %s1161_s11, 4  ;;  %s76_s15 = sshll.u32 %s1162_s13, 4  ;;  %s51_s12 = int_to_ptr.vmem [resolvable:$true] %s50_s12  ;;  %s77_s15 = int_to_ptr.vmem [resolvable:$true] %s76_s15 }
  0x39   :  { %s1058_s2 = scalar_lea.hbm %s1381_s3, 1024 }
  0x3a   :  { %p1059_p10 = scmp.ne.s32.totalorder %s1381_s3, %s1058_s2  ;;  %p1062_p11 = scmp.lt.u32.totalorder %s1058_s2, %s1381_s3 }
  0x3c   :  { %p1064_p12 = pnand %p1062_p11, %p1059_p10 }
  0x3e   :  { %1067 = shalt.err (!%p1064_p12)
}
  0x3f   :  { %s1068_s1 = scalar_lea.vmem %s51_s12, 1024  ;;  %p1073_p0 = scmp.lt.s32.totalorder %s51_s12, %s51_s12 }
  0x40   :  { %p1069_p13 = scmp.ne.s32.totalorder %s51_s12, %s1068_s1  ;;  %p1074_p1 = scmp.lt.s32.totalorder %s1068_s1, %s1068_s1 }
  0x42   :  { %p1075_p2 = por %p1074_p1, %p1073_p0 }
  0x44   :  { %p1076_p3 = pnand %p1075_p2, %p1069_p13 }
  0x46   :  { %1079 = shalt.err (!%p1076_p3)
}
  0x47   :  { %56 = dma.hbm_to_vmem [thread:$0]  %s1381_s3, 1024, %s51_s12, [#allocation6], %s1159_s4, %s1159_s4, %s1160_s16  }
  0x48   :  { %s1080_s26 = scalar_lea.hbm %s1385_s7, 2048 }
  0x49   :  { %p1081_p4 = scmp.ne.s32.totalorder %s1385_s7, %s1080_s26  ;;  %p1084_p5 = scmp.lt.u32.totalorder %s1080_s26, %s1385_s7 }
  0x4b   :  { %p1086_p6 = pnand %p1084_p5, %p1081_p4 }
  0x4d   :  { %1089 = shalt.err (!%p1086_p6)
}
  0x4e   :  { %s1090_s11 = scalar_lea.vmem %s77_s15, 2048  ;;  %p1095_p8 = scmp.lt.s32.totalorder %s77_s15, %s77_s15 }
  0x4f   :  { %p1091_p7 = scmp.ne.s32.totalorder %s77_s15, %s1090_s11  ;;  %p1096_p9 = scmp.lt.s32.totalorder %s1090_s11, %s1090_s11 }
  0x51   :  { %p1097_p10 = por %p1096_p9, %p1095_p8 }
  0x53   :  { %p1098_p11 = pnand %p1097_p10, %p1091_p7 }
  0x55   :  { %1101 = shalt.err (!%p1098_p11)
}
  0x56   :  { %s1163_s3 = smov 128   ;;  %s1164_s12 = smov 8  }
  0x57   :  { %82 = dma.hbm_to_vmem [thread:$0]  %s1385_s7, 2048, %s77_s15, [#allocation9], %s1163_s3, %s1163_s3, %s1164_s12  }
  0x58   :  { %1146 = dma.done.wait [#allocation3], 2048  }
  0x59   :  { %1147 = vsyncadd [#allocation3], 4294965248 }
  0x5a   :  { %1148 = dma.done.wait [#allocation6], 1040  }
  0x5b   :  { %1149 = vsyncadd [#allocation6], 4294966256 }
  0x5c   :  { %1150 = dma.done.wait [#allocation9], 2064  }
  0x5d   :  { %1151 = vsyncadd [#allocation9], 4294965232  ;;  %v1165_v0 = vmov 0.0   ;;  %v917_v1 = vld [vmem:[#allocation2 + $0x40] sm:$0xff]   ;;  %v919_v3 = vld [vmem:[#allocation2 + $0x48] sm:$0xff]   ;;  %vm1166_vm0 = vmmov 0  }
  0x5e   :  { %863 = vmatprep.subr.bf16.mxu1 %v1165_v0  ;;  %v918_v2 = vld [vmem:[#allocation2] sm:$0xff]   ;;  %823 = vmatprep.subr.bf16.mxu0 %v917_v1  ;;  %v920_v4 = vld [vmem:[#allocation2 + $0x8] sm:$0xff]   ;;  %v921_v5 = vld [vmem:[#allocation2 + $0x50] sm:$0xff]   ;;  %s1168_s17 = smov [#allocation11]  }
  0x5f   :  { %824 = vmatpush3.bf16.msra.mxu0 %v918_v2  ;;  %v922_v6 = vld [vmem:[#allocation2 + $0x10] sm:$0xff]   ;;  %v923_v7 = vld [vmem:[#allocation2 + $0x58] sm:$0xff]   ;;  %v925_v9 = vld [vmem:[#allocation2 + $0x60] sm:$0xff]   ;;  %879 = vmatprep.mubr.msk.bf16.mxu1 %vm1166_vm0, %v1165_v0  ;;  %s723_s7 = sshll.u32 %s1168_s17, 4  ;;  %s724_s7 = int_to_ptr.vmem [resolvable:$true] %s723_s7 }
  0x60   :  { %825 = vmatprep.subr.bf16.mxu0 %v919_v3  ;;  %v924_v8 = vld [vmem:[#allocation2 + $0x18] sm:$0xff]   ;;  %v926_v10 = vld [vmem:[#allocation2 + $0x20] sm:$0xff]   ;;  %v927_v11 = vld [vmem:[#allocation2 + $0x68] sm:$0xff]   ;;  %s1102_s15 = scalar_lea.vmem %s724_s7, 128  ;;  %p1107_p13 = scmp.lt.s32.totalorder %s724_s7, %s724_s7 }
  0x61   :  { %v928_v12 = vld [vmem:[#allocation2 + $0x28] sm:$0xff]   ;;  %v935_v13 = vld [vmem:[%s1378_s0 + $0x4] ss:$8 sps:$4 sm:$0xff]   ;;  %v933_v22 = vld [vmem:[%s1378_s0] ss:$8 sps:$4 sm:$0xff]   ;;  %p1103_p12 = scmp.ne.s32.totalorder %s724_s7, %s1102_s15  ;;  %p1108_p0 = scmp.lt.s32.totalorder %s1102_s15, %s1102_s15 }
  0x62   :  { %v936_v14 = vld [vmem:[#allocation7] sm:$0xff]   ;;  %v929_v15 = vld [vmem:[#allocation2 + $0x70] sm:$0xff]   ;;  %280 = vmatprep.mubr.bf16.mxu0 %v935_v13  ;;  %v931_v18 = vld [vmem:[#allocation2 + $0x78] sm:$0xff]  }
  0x63   :  { %826 = vmatpush3.bf16.msra.mxu0 %v920_v4  ;;  %864 = vmatpush3.bf16.msra.mxu1 %v936_v14  ;;  %v937_v16 = vld [vmem:[#allocation7 + $0x8] sm:$0xff]   ;;  %v938_v19 = vld [vmem:[#allocation7 + $0x10] sm:$0xff]   ;;  %v939_v21 = vld [vmem:[#allocation7 + $0x18] sm:$0xff]   ;;  %p1109_p1 = por %p1108_p0, %p1107_p13 }
  0x64   :  { %827 = vmatprep.subr.bf16.mxu0 %v921_v5  ;;  %v930_v17 = vld [vmem:[#allocation2 + $0x30] sm:$0xff]   ;;  %865 = vmatprep.subr.bf16.mxu1 %v1165_v0  ;;  %v932_v20 = vld [vmem:[#allocation2 + $0x38] sm:$0xff]   ;;  %v940_v23 = vld [vmem:[#allocation7 + $0x20] sm:$0xff]  }
  0x65   :  { %v941_v24 = vld [vmem:[#allocation7 + $0x28] sm:$0xff]   ;;  %v942_v25 = vld [vmem:[#allocation7 + $0x30] sm:$0xff]   ;;  %v943_v26 = vld [vmem:[#allocation7 + $0x38] sm:$0xff]   ;;  %p1110_p2 = pnand %p1109_p1, %p1103_p12 }
  0x66   :  { %v944_v27 = vld [vmem:[%s1383_s5] sm:$0xff]   ;;  %v945_v28 = vld [vmem:[%s1383_s5 + $0x8] sm:$0xff]   ;;  %v946_v29 = vld [vmem:[%s1383_s5 + $0x10] sm:$0xff]  }
  0x67   :  { %828 = vmatpush3.bf16.msra.mxu0 %v922_v6  ;;  %866 = vmatpush3.bf16.msra.mxu1 %v937_v16  ;;  %v947_v30 = vld [vmem:[%s1383_s5 + $0x18] sm:$0xff]   ;;  %v948_v31 = vld [vmem:[%s1383_s5 + $0x20] sm:$0xff]   ;;  %v949_v32 = vld [vmem:[%s1383_s5 + $0x28] sm:$0xff]  }
  0x68   :  { %829 = vmatprep.subr.bf16.mxu0 %v923_v7  ;;  %867 = vmatprep.subr.bf16.mxu1 %v1165_v0  ;;  %v753_v34 = vld [vmem:[#allocation5] ss:$0 sm:$0xff]  ;;  %v951_v46 = vld [vmem:[%s1383_s5 + $0x38] sm:$0xff]   ;;  %v955_v50 = vld [vmem:[#allocation10 + $0x10] ss:$8 sps:$4 sm:$0xff]   ;;  %v1167_v7 = vmov 0  }
  0x69   :  { %v950_v45 = vld [vmem:[%s1383_s5 + $0x30] sm:$0xff]   ;;  %v954_v48 = vld [vmem:[#allocation10 + $0x4] ss:$8 sps:$4 sm:$0xff]   ;;  %v961_v54 = vld [vmem:[#allocation10 + $0x30] ss:$8 sps:$4 sm:$0xff]  }
  0x6a   :  { %v952_v47 = vld [vmem:[#allocation10] ss:$8 sps:$4 sm:$0xff]   ;;  %v957_v49 = vld [vmem:[#allocation10 + $0x14] ss:$8 sps:$4 sm:$0xff]   ;;  %v960_v51 = vld [vmem:[#allocation10 + $0x24] ss:$8 sps:$4 sm:$0xff]  }
  0x6b   :  { %830 = vmatpush3.bf16.msra.mxu0 %v924_v8  ;;  %868 = vmatpush3.bf16.msra.mxu1 %v938_v19  ;;  %v958_v52 = vld [vmem:[#allocation10 + $0x20] ss:$8 sps:$4 sm:$0xff]   ;;  %v963_v53 = vld [vmem:[#allocation10 + $0x34] ss:$8 sps:$4 sm:$0xff]   ;;  %v966_v55 = vld [vmem:[#allocation10 + $0x44] ss:$8 sps:$4 sm:$0xff]  }
  0x6c   :  { %831 = vmatprep.subr.bf16.mxu0 %v925_v9  ;;  %869 = vmatprep.subr.bf16.mxu1 %v1165_v0  ;;  %v964_v56 = vld [vmem:[#allocation10 + $0x40] ss:$8 sps:$4 sm:$0xff]   ;;  %v969_v57 = vld [vmem:[#allocation10 + $0x54] ss:$8 sps:$4 sm:$0xff]   ;;  %v967_v58 = vld [vmem:[#allocation10 + $0x50] ss:$8 sps:$4 sm:$0xff]  }
  0x6d   :  { %v772_v59 = vld [vmem:[#allocation8] ss:$0 sm:$0xff]  ;;  %v972_v3 = vld [vmem:[#allocation10 + $0x64] ss:$8 sps:$4 sm:$0xff]   ;;  %v970_v4 = vld [vmem:[#allocation10 + $0x60] ss:$8 sps:$4 sm:$0xff]  }
  0x6e   :  { %v975_v5 = vld [vmem:[#allocation10 + $0x74] ss:$8 sps:$4 sm:$0xff]   ;;  %v973_v6 = vld [vmem:[#allocation10 + $0x70] ss:$8 sps:$4 sm:$0xff]   ;;  %v783_v8 = vld [vmem:[%s1384_s6] ss:$0 sm:$0xff] }
  0x6f   :  { %832 = vmatpush3.bf16.msra.mxu0 %v926_v10  ;;  %870 = vmatpush3.bf16.msra.mxu1 %v939_v21 }
  0x70   :  { %833 = vmatprep.subr.bf16.mxu0 %v927_v11  ;;  %871 = vmatprep.subr.bf16.mxu1 %v1165_v0 }
  0x73   :  { %834 = vmatpush3.bf16.msra.mxu0 %v928_v12  ;;  %872 = vmatpush3.bf16.msra.mxu1 %v940_v23 }
  0x74   :  { %835 = vmatprep.subr.bf16.mxu0 %v929_v15  ;;  %873 = vmatprep.subr.bf16.mxu1 %v1165_v0 }
  0x77   :  { %836 = vmatpush3.bf16.msra.mxu0 %v930_v17  ;;  %874 = vmatpush3.bf16.msra.mxu1 %v941_v24 }
  0x78   :  { %837 = vmatprep.subr.bf16.mxu0 %v931_v18  ;;  %875 = vmatprep.subr.bf16.mxu1 %v1165_v0 }
  0x7b   :  { %838 = vmatpush3.bf16.msra.mxu0 %v932_v20  ;;  %876 = vmatpush3.bf16.msra.mxu1 %v942_v25 }
  0x7c   :  { %883 = vmatprep.subr.bf16.mxu0 %v1165_v0  ;;  %877 = vmatprep.subr.bf16.mxu1 %v1165_v0 }
  0x7e   :  { %281 = vmatmul.mubr.bf16.vlgmr.msra.gmra.mrb[0].mxu0 %v933_v22 }
  0x7f   :  { %878 = vmatpush3.bf16.msra.mxu1 %v943_v26  ;;  %899 = vmatprep.mubr.msk.bf16.mxu0 %vm1166_vm0, %v1165_v0 }
  0x80   :  { %884 = vmatpush3.bf16.msra.mxu0 %v944_v27  ;;  %637 = vmatprep.subr.bf16.mxu1 %v954_v48 }
  0x81   :  { %885 = vmatprep.subr.bf16.mxu0 %v1165_v0 }
  0x84   :  { %886 = vmatpush3.bf16.msra.mxu0 %v945_v28 }
  0x85   :  { %887 = vmatprep.subr.bf16.mxu0 %v1165_v0 }
  0x88   :  { %888 = vmatpush3.bf16.msra.mxu0 %v946_v29 }
  0x89   :  { %889 = vmatprep.subr.bf16.mxu0 %v1165_v0 }
  0x8c   :  { %890 = vmatpush3.bf16.msra.mxu0 %v947_v30 }
  0x8d   :  { %891 = vmatprep.subr.bf16.mxu0 %v1165_v0 }
  0x90   :  { %892 = vmatpush3.bf16.msra.mxu0 %v948_v31 }
  0x91   :  { %893 = vmatprep.subr.bf16.mxu0 %v1165_v0 }
  0x94   :  { %894 = vmatpush3.bf16.msra.mxu0 %v949_v32 }
  0x95   :  { %895 = vmatprep.subr.bf16.mxu0 %v1165_v0 }
  0x98   :  { %896 = vmatpush3.bf16.msra.mxu0 %v950_v45 }
  0x99   :  { %897 = vmatprep.subr.bf16.mxu0 %v1165_v0 }
  0x9c   :  { %898 = vmatpush3.bf16.msra.mxu0 %v951_v46 }
 0x151   :  { %v839_v33 = vpop.f32.mrb[0].mxu0 }
 0x152   :  { %v840_v35 = vpop.f32.mrb[1].mxu0 }
 0x153   :  { %v841_v36 = vadd.f32 %v840_v35, %v839_v33  ;;  %v842_v37 = vpop.f32.mrb[2].mxu0 }
 0x154   :  { %v843_v38 = vpop.f32.mrb[3].mxu0 }
 0x155   :  { %v283_v39 = vadd.f32 %v841_v36, %v753_v34  ;;  %v844_v40 = vadd.f32 %v843_v38, %v842_v37 }
 0x157   :  { %v286_v41 = vadd.f32 %v844_v40, %v753_v34  ;;  %v289_v42 = vmax.f32 %v283_v39, 0.0 }
 0x159   :  { %v290_v43 = vmax.f32 %v286_v41, 0.0 }
 0x15b   :  { %v291_v44 = vpack.c.bf16 %v290_v43, %v289_v42 }
 0x15d   :  { %880 = vmatmul.mubr.bf16.vlgmr.msra.gmra.mrb[0].mxu1 %v291_v44 }
 0x15e   :  { %638 = vmatpush1.bf16.msra.mxu1 %v952_v47  ;;  %669 = vmatprep.mubr.bf16.mxu1 %v1167_v7 }
 0x15f   :  { %639 = vmatprep.subr.bf16.mxu1 %v957_v49 }
 0x162   :  { %640 = vmatpush1.bf16.msra.mxu1 %v955_v50 }
 0x163   :  { %641 = vmatprep.subr.bf16.mxu1 %v960_v51 }
 0x166   :  { %642 = vmatpush1.bf16.msra.mxu1 %v958_v52 }
 0x167   :  { %643 = vmatprep.subr.bf16.mxu1 %v963_v53 }
 0x16a   :  { %644 = vmatpush1.bf16.msra.mxu1 %v961_v54 }
 0x16b   :  { %645 = vmatprep.subr.bf16.mxu1 %v966_v55 }
 0x16e   :  { %646 = vmatpush1.bf16.msra.mxu1 %v964_v56 }
 0x16f   :  { %647 = vmatprep.subr.bf16.mxu1 %v969_v57 }
 0x172   :  { %648 = vmatpush1.bf16.msra.mxu1 %v967_v58 }
 0x173   :  { %649 = vmatprep.subr.bf16.mxu1 %v972_v3 }
 0x176   :  { %650 = vmatpush1.bf16.msra.mxu1 %v970_v4 }
 0x177   :  { %651 = vmatprep.subr.bf16.mxu1 %v975_v5 }
 0x17a   :  { %652 = vmatpush1.bf16.msra.mxu1 %v973_v6 }
 0x230   :  { %v397_v60 = vpop.f32.mrb[0].mxu1 }
 0x231   :  { %v881_v61 = vpop.f32.mrb[1].mxu1  ;;  %v398_v63 = vadd.f32 %v772_v59, %v397_v60 }
 0x232   :  { %v400_v62 = vpop.f32.mrb[2].mxu1 }
 0x233   :  { %v401_v0 = vadd.f32 %v772_v59, %v400_v62  ;;  %v882_v1 = vpop.f32.mrb[3].mxu1 }
 0x235   :  { %v404_v2 = vpack.c.bf16 %v401_v0, %v398_v63 }
 0x237   :  { %822 = vst [vmem:[#allocation11] sm:$0xff] %v404_v2   ;;  %900 = vmatmul.mubr.bf16.vlgmr.msra.gmra.mrb[4].mxu0 %v404_v2 }
 0x30a   :  { %v519_v9 = vpop.f32.mrb[4].mxu0 }
 0x30b   :  { %v520_v10 = vadd.f32 %v783_v8, %v519_v9  ;;  %v901_v11 = vpop.f32.mrb[5].mxu0 }
 0x30c   :  { %v522_v12 = vpop.f32.mrb[6].mxu0 }
 0x30d   :  { %v523_v13 = vadd.f32 %v783_v8, %v522_v12  ;;  %v902_v14 = vpop.f32.mrb[7].mxu0  ;;  %v526_v15 = vmax.f32 %v520_v10, 0.0 }
 0x30f   :  { %v527_v16 = vmax.f32 %v523_v13, 0.0 }
 0x311   :  { %v528_v17 = vpack.c.bf16 %v527_v16, %v526_v15 }
 0x313   :  { %670 = vmatmul.mubr.bf16.vlgmr.msra.gmra.mrb[4].mxu1 %v528_v17 }
 0x314   :  { %1113 = shalt.err (!%p1110_p2)
}
 0x315   :  { %s1114_s2 = scalar_lea.hbm %s1387_s9, 128 }
 0x316   :  { %p1115_p3 = scmp.ne.s32.totalorder %s1387_s9, %s1114_s2  ;;  %p1118_p4 = scmp.lt.u32.totalorder %s1114_s2, %s1387_s9 }
 0x318   :  { %p1120_p5 = pnand %p1118_p4, %p1115_p3 }
 0x31a   :  { %1123 = shalt.err (!%p1120_p5)
}
 0x31b   :  { %729 = dma.vmem_to_hbm [thread:$0]  %s724_s7, 128, %s1387_s9, [#allocation4], %s1159_s4, %s1159_s4, %s1160_s16   ;;  %v547_v18 = vlaneseq }
 0x31c   :  { %v545_v21 = vld [vmem:[%s1386_s8] sm:$0x3]  ;;  %s1169_s8 = smov [#allocation12]  }
 0x31d   :  { %v548_v19 = vshrl.u32 %v547_v18, 7  ;;  %s735_s9 = sshll.u32 %s1169_s8, 4  ;;  %s736_s9 = int_to_ptr.vmem [resolvable:$true] %s735_s9 }
 0x31e   :  { %s1124_s4 = scalar_lea.vmem %s736_s9, 256  ;;  %p1129_p7 = scmp.lt.s32.totalorder %s736_s9, %s736_s9 }
 0x31f   :  { %v549_v20 = vsub.s32 0, %v548_v19  ;;  %v553_v22 = vsub.s32 1, %v548_v19  ;;  %p1125_p6 = scmp.ne.s32.totalorder %s736_s9, %s1124_s4  ;;  %p1130_p8 = scmp.lt.s32.totalorder %s1124_s4, %s1124_s4 }
 0x321   :  { %v550_v23 = vrot.slane %v545_v21, %v549_v20  ;;  %v554_v24 = vrot.slane %v545_v21, %v553_v22  ;;  %p1131_p9 = por %p1130_p8, %p1129_p7 }
 0x323   :  { %p1132_p10 = pnand %p1131_p9, %p1125_p6 }
 0x3e6   :  { %v671_v25 = vpop.f32.mrb[4].mxu1 }
 0x3e7   :  { %v672_v26 = vadd.f32 %v671_v25, %v550_v23  ;;  %v673_v27 = vpop.f32.mrb[5].mxu1 }
 0x3e8   :  { %v674_v28 = vadd.f32 %v673_v27, %v554_v24  ;;  %v675_v29 = vpop.f32.mrb[6].mxu1 }
 0x3e9   :  { %v808_v30 = vmul.f32 -1.442695, %v672_v26  ;;  %v676_v31 = vadd.f32 %v675_v29, %v550_v23  ;;  %v677_v32 = vpop.f32.mrb[7].mxu1 }
 0x3ea   :  { %v809_v33 = vmul.f32 -1.442695, %v674_v28  ;;  %v678_v34 = vadd.f32 %v677_v32, %v554_v24 }
 0x3eb   :  { %976 = vpow2.f32 %v808_v30  ;;  %v810_v35 = vmul.f32 -1.442695, %v676_v31 }
 0x3ec   :  { %978 = vpow2.f32 %v809_v33  ;;  %v811_v36 = vmul.f32 -1.442695, %v678_v34 }
 0x3ed   :  { %980 = vpow2.f32 %v810_v35 }
 0x3ee   :  { %982 = vpow2.f32 %v811_v36 }
 0x3f5   :  { %v977_v37 = vpop.eup %976 }
 0x3f6   :  { %v979_v38 = vpop.eup %978  ;;  %v692_v39 = vadd.f32 1.0, %v977_v37 }
 0x3f7   :  { %v981_v40 = vpop.eup %980  ;;  %v693_v41 = vadd.f32 1.0, %v979_v38 }
 0x3f8   :  { %v983_v42 = vpop.eup %982  ;;  %984 = vrcp.f32 %v692_v39  ;;  %v694_v43 = vadd.f32 1.0, %v981_v40 }
 0x3f9   :  { %986 = vrcp.f32 %v693_v41  ;;  %v695_v44 = vadd.f32 1.0, %v983_v42 }
 0x3fa   :  { %988 = vrcp.f32 %v694_v43 }
 0x3fb   :  { %990 = vrcp.f32 %v695_v44 }
 0x402   :  { %v985_v45 = vpop.eup %984 }
 0x403   :  { %v987_v46 = vpop.eup %986 }
 0x404   :  { %v989_v47 = vpop.eup %988  ;;  %v816_v48 = vpack.c.bf16 %v987_v46, %v985_v45 }
 0x405   :  { %v991_v49 = vpop.eup %990 }
 0x406   :  { %v817_v50 = vpack.c.bf16 %v991_v49, %v989_v47  ;;  %716 = vst [vmem:[#allocation12] sm:$0xff] %v816_v48 }
 0x408   :  { %717 = vst [vmem:[#allocation12 + $0x8] sm:$0xff] %v817_v50 }
 0x409   :  { %1135 = shalt.err (!%p1132_p10)
}
 0x40a   :  { %s1136_s25 = scalar_lea.hbm %s1388_s10, 256 }
 0x40b   :  { %p1137_p11 = scmp.ne.s32.totalorder %s1388_s10, %s1136_s25  ;;  %p1140_p12 = scmp.lt.u32.totalorder %s1136_s25, %s1388_s10 }
 0x40d   :  { %p1142_p13 = pnand %p1140_p12, %p1137_p11 }
 0x40f   :  { %1145 = shalt.err (!%p1142_p13)
}
 0x410   :  { %741 = dma.vmem_to_hbm [thread:$0]  %s736_s9, 256, %s1388_s10, [#allocation13], %s1163_s3, %s1163_s3, %s1164_s12  }
 0x411   :  { %1152 = dma.done.wait [#allocation4], 128  }
 0x412   :  { %1153 = vsyncadd [#allocation4], 4294967168 }
 0x413   :  { %1154 = dma.done.wait [#allocation13], 256  }
 0x414   :  { %1155 = vsyncadd [#allocation13], 4294967040 }
 0x415   :  { %748 = vsyncpa [#allocation3], 1 }
 0x416   :  { %749 = vsyncpa [#allocation6], 1 }
 0x417   :  { %750 = vsyncpa [#allocation9], 1 }
 0x418   :  { %751 = vsyncpa [#allocation4], 1 }
 0x419   :  { %752 = vsyncpa [#allocation13], 1 }

</bundles_post_ra>
